<compile_context>
chip_gen: v7x
topology: tpu7x:2x2x1
jax: 0.10.0
libtpu: 0.0.40
codegen_flags: <defaults>
</compile_context>

<pallas_src>
import jax
import jax.numpy as jnp
from jax.experimental import pallas as pl
from jax.experimental.pallas import tpu as pltpu

FILTER_SIZE = 128
NUM_ENC = 6
INCLUDE_INPUT = True
IN_DIM = (3 + 3 * 2 * NUM_ENC) if INCLUDE_INPUT else (3 * 2 * NUM_ENC)  # 39
OUT_DIM = 4

_ROW_ALIGN = 32  # bf16 packs 16 rows per sublane group; 32 avoids layout cliffs


# --------------------------------------------------------------------------
# Kernels
# --------------------------------------------------------------------------
def _mlp_trunk(x_ref, w1_ref, b1_ref, w2_ref, b2_ref, w3_ref, b3_ref):
    """Layers 1-3 (+ReLU): bf16 MXU operands, f32 accumulation/elementwise."""
    bf16 = jnp.bfloat16
    f32 = jnp.float32
    # In-kernel downcast (review item 1): x arrives as f32, cast is VPU work
    # hidden under the MXU instead of a separate wrapper-side HBM pass.
    x = x_ref[...].astype(bf16)                                   # (tm, 39)
    h = jnp.dot(x, w1_ref[...], preferred_element_type=f32) + b1_ref[...]
    h = jnp.maximum(h, 0.0)
    h = jnp.dot(h.astype(bf16), w2_ref[...], preferred_element_type=f32) + b2_ref[...]
    h = jnp.maximum(h, 0.0)
    h = jnp.dot(h.astype(bf16), w3_ref[...], preferred_element_type=f32) + b3_ref[...]
    return jnp.maximum(h, 0.0)                                    # (tm, 128) f32


def tiny_nerf_kernel_mxu(x_ref, w1_ref, b1_ref, w2_ref, b2_ref, w3_ref, b3_ref,
                         w4_ref, b4_ref, o_ref):
    """Default path: layer 4 (128 -> 4) on the MXU."""
    h = _mlp_trunk(x_ref, w1_ref, b1_ref, w2_ref, b2_ref, w3_ref, b3_ref)
    y = jnp.dot(h.astype(jnp.bfloat16), w4_ref[...],
                preferred_element_type=jnp.float32) + b4_ref[...]
    o_ref[...] = y.astype(o_ref.dtype)


def tiny_nerf_kernel_vpu(x_ref, w1_ref, b1_ref, w2_ref, b2_ref, w3_ref, b3_ref,
                         w4t_ref, b4_ref, o_ref):
    """Alternate path (review item: layer-4 off the MXU): the 128 -> 4 layer
    as 4 broadcast-multiply + lane-reduce ops on the VPU/XLU.  Enable only
    when a bundle dump confirms the MXU (vector-extended) slot saturates."""
    h = _mlp_trunk(x_ref, w1_ref, b1_ref, w2_ref, b2_ref, w3_ref, b3_ref)
    w4t = w4t_ref[...]                                            # (4, 128) f32
    b4 = b4_ref[...]                                              # (1, 4)  f32
    for j in range(OUT_DIM):                                      # unrolled
        col = jnp.sum(h * w4t[j:j + 1, :], axis=-1, keepdims=True) + b4[:, j:j + 1]
        o_ref[:, j:j + 1] = col.astype(o_ref.dtype)


# --------------------------------------------------------------------------
# Tiling / wrapper
# --------------------------------------------------------------------------
def _round_up(x, m):
    return ((x + m - 1) // m) * m


def _detect_vmem_bytes():
    try:
        return int(pltpu.get_tpu_info().vmem_capacity_bytes)
    except Exception:
        return 64 * 1024 * 1024  # conservative (v7x-sized) fallback


def _pick_tm(n, *, vmem_bytes, requested=None):
    """Batch tile: big enough to amortize the ~0.35us/step overhead, small
    enough for the chip's VMEM, with an even grid for v7x's 2 TensorCores."""
    big_vmem = vmem_bytes >= 100 * 1024 * 1024       # v5e/v6e: 128 MiB
    max_tm = 8192 if big_vmem else 4096              # v7x: 64 MiB -> stay small
    if requested is not None:                        # clamp user override
        return min(max_tm, max(_ROW_ALIGN, _round_up(requested, _ROW_ALIGN)))
    if n <= max_tm:
        if n > 512:
            # split into 2 balanced tiles so a 2-TC part shares the work
            return _round_up(pl.cdiv(n, 2), _ROW_ALIGN)
        return _round_up(max(n, 1), _ROW_ALIGN)      # tiny input: single step
    steps = pl.cdiv(n, max_tm)
    if steps % 2 == 1:
        steps += 1                                   # even grid for v7x's 2 TCs
    return _round_up(pl.cdiv(n, steps), _ROW_ALIGN)


def tiny_nerf_forward(x, params, *, tm=None, layer4_on_mxu=True):
    """x: (N, IN_DIM) float32 (or bfloat16).
    params: w1..w4 stored as (in, out); b1..b4 stored as (1, out)."""
    N, D = x.shape
    assert D == IN_DIM

    vmem_bytes = _detect_vmem_bytes()
    big_vmem = vmem_bytes >= 100 * 1024 * 1024
    tm = _pick_tm(N, vmem_bytes=vmem_bytes, requested=tm)
    grid = (pl.cdiv(N, tm),)

    # Weights are tiny (~66 KiB total) and DMA'd once -> wrapper cast is free.
    ws = [params[f"w{i}"].astype(jnp.bfloat16) for i in (1, 2, 3)]
    bs = [params[f"b{i}"].astype(jnp.float32) for i in (1, 2, 3, 4)]
    if layer4_on_mxu:
        w4 = params["w4"].astype(jnp.bfloat16)        # (128, 4) for the MXU dot
        kernel = tiny_nerf_kernel_mxu
    else:
        w4 = params["w4"].T.astype(jnp.float32)       # (4, 128): rows = out cols
        kernel = tiny_nerf_kernel_vpu

    # Constant index_map -> DMA'd once, resident in VMEM for the whole grid.
    resident = lambda a: pl.BlockSpec(a.shape, lambda i: (0, 0))

    flops = 2 * N * (IN_DIM * FILTER_SIZE
                     + 2 * FILTER_SIZE * FILTER_SIZE
                     + FILTER_SIZE * OUT_DIM)
    bytes_accessed = (N * IN_DIM * x.dtype.itemsize            # f32 input DMA
                      + N * OUT_DIM * 4
                      + sum(int(w.size) * w.dtype.itemsize for w in ws)
                      + int(w4.size) * w4.dtype.itemsize
                      + sum(int(b.size) * 4 for b in bs))

    return pl.pallas_call(
        kernel,
        out_shape=jax.ShapeDtypeStruct((N, OUT_DIM), jnp.float32),
        grid_spec=pltpu.PrefetchScalarGridSpec(
            num_scalar_prefetch=0,
            grid=grid,
            in_specs=[
                pl.BlockSpec((tm, IN_DIM), lambda i: (i, 0)),  # x batch tile (f32)
                resident(ws[0]), resident(bs[0]),
                resident(ws[1]), resident(bs[1]),
                resident(ws[2]), resident(bs[2]),
                resident(w4), resident(bs[3]),
            ],
            out_specs=pl.BlockSpec((tm, OUT_DIM), lambda i: (i, 0)),
        ),
        compiler_params=pltpu.CompilerParams(
            # TODO(synk): on v7x, confirm in xprof that both TensorCores get
            # grid steps under "parallel"; otherwise try pltpu.CORE_PARALLEL.
            dimension_semantics=("parallel",),
            vmem_limit_bytes=(96 if big_vmem else 48) * 1024 * 1024,
        ),
        cost_estimate=pl.CostEstimate(
            flops=flops, transcendentals=0, bytes_accessed=bytes_accessed),
    )(x, ws[0], bs[0], ws[1], bs[1], ws[2], bs[2], w4, bs[3])


# --------------------------------------------------------------------------
# Parameters + reference
# --------------------------------------------------------------------------
def make_params(key):
    """Deterministic synthetic parameters matching the PyTorch module's shapes.
    Weights stored pre-transposed as (in, out); biases as (1, out)."""
    dims = [(IN_DIM, FILTER_SIZE),
            (FILTER_SIZE, FILTER_SIZE),
            (FILTER_SIZE, FILTER_SIZE),
            (FILTER_SIZE, OUT_DIM)]
    params = {}
    for idx, (fan_in, fan_out) in enumerate(dims, start=1):
        key, kw, kb = jax.random.split(key, 3)
        bound = 1.0 / float(fan_in) ** 0.5
        params[f"w{idx}"] = jax.random.uniform(
            kw, (fan_in, fan_out), jnp.float32, -bound, bound)
        params[f"b{idx}"] = jax.random.uniform(
            kb, (1, fan_out), jnp.float32, -bound, bound)
    return params


def reference_forward(x, p):
    """Pure-JAX reference with the same bf16-operand / f32-accumulate policy
    (intentional precision choice vs. a pure-f32 PyTorch forward)."""
    bf16 = jnp.bfloat16
    f32 = jnp.float32

    def lin(h, w, b):
        return jnp.dot(h.astype(bf16), w.astype(bf16),
                       preferred_element_type=f32) + b.astype(f32)

    h = jnp.maximum(lin(x, p["w1"], p["b1"]), 0.0)
    h = jnp.maximum(lin(h, p["w2"], p["b2"]), 0.0)
    h = jnp.maximum(lin(h, p["w3"], p["b3"]), 0.0)
    return lin(h, p["w4"], p["b4"])


if __name__ == "__main__":
    key = jax.random.PRNGKey(0)
    kp, kx = jax.random.split(key)
    params = make_params(kp)

    # N deliberately NOT divisible by the tile -> exercises the ragged tail
    # (partial-block masking) on real hardware, per the review's concern.
    N = 1000
    x = jax.random.normal(kx, (N, IN_DIM), jnp.float32)

    ref = reference_forward(x, params)

    # Default (MXU layer-4) path.
    out_mxu = jax.block_until_ready(tiny_nerf_forward(x, params))
    assert out_mxu.shape == (N, OUT_DIM) and out_mxu.dtype == jnp.float32
    assert jnp.allclose(out_mxu, ref, atol=2e-2, rtol=2e-2), \
        float(jnp.max(jnp.abs(out_mxu - ref)))

    # VPU/XLU layer-4 path (opt-in), checked for correctness too.
    out_vpu = jax.block_until_ready(
        tiny_nerf_forward(x, params, layer4_on_mxu=False))
    assert out_vpu.shape == (N, OUT_DIM) and out_vpu.dtype == jnp.float32
    assert jnp.allclose(out_vpu, ref, atol=2e-2, rtol=2e-2), \
        float(jnp.max(jnp.abs(out_vpu - ref)))

    print("KERNEL_OK")
</pallas_src>

<mosaic_0001>
module attributes {stable_mosaic.version = 11 : i64} {
  func.func @tiny_nerf_kernel_mxu(%arg0: i32, %arg1: memref<512x39xf32, #tpu.memory_space<vmem>>, %arg2: memref<39x128xbf16, #tpu.memory_space<vmem>>, %arg3: memref<1x128xf32, #tpu.memory_space<vmem>>, %arg4: memref<128x128xbf16, #tpu.memory_space<vmem>>, %arg5: memref<1x128xf32, #tpu.memory_space<vmem>>, %arg6: memref<128x128xbf16, #tpu.memory_space<vmem>>, %arg7: memref<1x128xf32, #tpu.memory_space<vmem>>, %arg8: memref<128x4xbf16, #tpu.memory_space<vmem>>, %arg9: memref<1x4xf32, #tpu.memory_space<vmem>>, %arg10: memref<512x4xf32, #tpu.memory_space<vmem>>) attributes {dimension_semantics = [#tpu.dimension_semantics<parallel>], iteration_bounds = array<i64: 2>, scalar_prefetch = 0 : i64, scratch_operands = 0 : i64, tpu.core_type = #tpu.core_type<tc>, window_params = [{transform_indices = @transform_0, window_bounds = array<i64: 512, 39>}, {pipeline_mode = #tpu.pipeline_mode<synchronous>, transform_indices = @transform_1, window_bounds = array<i64: 39, 128>}, {pipeline_mode = #tpu.pipeline_mode<synchronous>, transform_indices = @transform_2, window_bounds = array<i64: 1, 128>}, {pipeline_mode = #tpu.pipeline_mode<synchronous>, transform_indices = @transform_3, window_bounds = array<i64: 128, 128>}, {pipeline_mode = #tpu.pipeline_mode<synchronous>, transform_indices = @transform_4, window_bounds = array<i64: 1, 128>}, {pipeline_mode = #tpu.pipeline_mode<synchronous>, transform_indices = @transform_5, window_bounds = array<i64: 128, 128>}, {pipeline_mode = #tpu.pipeline_mode<synchronous>, transform_indices = @transform_6, window_bounds = array<i64: 1, 128>}, {pipeline_mode = #tpu.pipeline_mode<synchronous>, transform_indices = @transform_7, window_bounds = array<i64: 128, 4>}, {pipeline_mode = #tpu.pipeline_mode<synchronous>, transform_indices = @transform_8, window_bounds = array<i64: 1, 4>}, {transform_indices = @transform_9, window_bounds = array<i64: 512, 4>}]} {
    %c0 = arith.constant 0 : index
    %c0_0 = arith.constant 0 : index
    %0 = vector.load %arg1[%c0, %c0_0] : memref<512x39xf32, #tpu.memory_space<vmem>>, vector<512x39xf32>
    %1 = arith.truncf %0 : vector<512x39xf32> to vector<512x39xbf16>
    %c0_1 = arith.constant 0 : index
    %c0_2 = arith.constant 0 : index
    %2 = vector.load %arg2[%c0_1, %c0_2] : memref<39x128xbf16, #tpu.memory_space<vmem>>, vector<39x128xbf16>
    %cst = arith.constant dense<0.000000e+00> : vector<512x128xf32>
    %3 = tpu.matmul %1, %2, %cst {dimension_numbers = #tpu.dot_dimension_numbers<[1], [0], [0], [1], [0, 0, 1, 1], [], []>} : vector<512x39xbf16>, vector<39x128xbf16>, vector<512x128xf32> -> vector<512x128xf32>
    %c0_3 = arith.constant 0 : index
    %c0_4 = arith.constant 0 : index
    %4 = vector.load %arg3[%c0_3, %c0_4] : memref<1x128xf32, #tpu.memory_space<vmem>>, vector<1x128xf32>
    %5 = vector.broadcast %4 : vector<1x128xf32> to vector<512x128xf32>
    %6 = arith.addf %3, %5 : vector<512x128xf32>
    %cst_5 = arith.constant 0.000000e+00 : f32
    %7 = vector.broadcast %cst_5 : f32 to vector<512x128xf32>
    %8 = arith.maximumf %6, %7 : vector<512x128xf32>
    %9 = arith.truncf %8 : vector<512x128xf32> to vector<512x128xbf16>
    %c0_6 = arith.constant 0 : index
    %c0_7 = arith.constant 0 : index
    %10 = vector.load %arg4[%c0_6, %c0_7] : memref<128x128xbf16, #tpu.memory_space<vmem>>, vector<128x128xbf16>
    %cst_8 = arith.constant dense<0.000000e+00> : vector<512x128xf32>
    %11 = tpu.matmul %9, %10, %cst_8 {dimension_numbers = #tpu.dot_dimension_numbers<[1], [0], [0], [1], [0, 0, 1, 1], [], []>} : vector<512x128xbf16>, vector<128x128xbf16>, vector<512x128xf32> -> vector<512x128xf32>
    %c0_9 = arith.constant 0 : index
    %c0_10 = arith.constant 0 : index
    %12 = vector.load %arg5[%c0_9, %c0_10] : memref<1x128xf32, #tpu.memory_space<vmem>>, vector<1x128xf32>
    %13 = vector.broadcast %12 : vector<1x128xf32> to vector<512x128xf32>
    %14 = arith.addf %11, %13 : vector<512x128xf32>
    %cst_11 = arith.constant 0.000000e+00 : f32
    %15 = vector.broadcast %cst_11 : f32 to vector<512x128xf32>
    %16 = arith.maximumf %14, %15 : vector<512x128xf32>
    %17 = arith.truncf %16 : vector<512x128xf32> to vector<512x128xbf16>
    %c0_12 = arith.constant 0 : index
    %c0_13 = arith.constant 0 : index
    %18 = vector.load %arg6[%c0_12, %c0_13] : memref<128x128xbf16, #tpu.memory_space<vmem>>, vector<128x128xbf16>
    %cst_14 = arith.constant dense<0.000000e+00> : vector<512x128xf32>
    %19 = tpu.matmul %17, %18, %cst_14 {dimension_numbers = #tpu.dot_dimension_numbers<[1], [0], [0], [1], [0, 0, 1, 1], [], []>} : vector<512x128xbf16>, vector<128x128xbf16>, vector<512x128xf32> -> vector<512x128xf32>
    %c0_15 = arith.constant 0 : index
    %c0_16 = arith.constant 0 : index
    %20 = vector.load %arg7[%c0_15, %c0_16] : memref<1x128xf32, #tpu.memory_space<vmem>>, vector<1x128xf32>
    %21 = vector.broadcast %20 : vector<1x128xf32> to vector<512x128xf32>
    %22 = arith.addf %19, %21 : vector<512x128xf32>
    %cst_17 = arith.constant 0.000000e+00 : f32
    %23 = vector.broadcast %cst_17 : f32 to vector<512x128xf32>
    %24 = arith.maximumf %22, %23 : vector<512x128xf32>
    %25 = arith.truncf %24 : vector<512x128xf32> to vector<512x128xbf16>
    %c0_18 = arith.constant 0 : index
    %c0_19 = arith.constant 0 : index
    %26 = vector.load %arg8[%c0_18, %c0_19] : memref<128x4xbf16, #tpu.memory_space<vmem>>, vector<128x4xbf16>
    %cst_20 = arith.constant dense<0.000000e+00> : vector<512x4xf32>
    %27 = tpu.matmul %25, %26, %cst_20 {dimension_numbers = #tpu.dot_dimension_numbers<[1], [0], [0], [1], [0, 0, 1, 1], [], []>} : vector<512x128xbf16>, vector<128x4xbf16>, vector<512x4xf32> -> vector<512x4xf32>
    %c0_21 = arith.constant 0 : index
    %c0_22 = arith.constant 0 : index
    %28 = vector.load %arg9[%c0_21, %c0_22] : memref<1x4xf32, #tpu.memory_space<vmem>>, vector<1x4xf32>
    %29 = vector.broadcast %28 : vector<1x4xf32> to vector<512x4xf32>
    %30 = arith.addf %27, %29 : vector<512x4xf32>
    %c0_23 = arith.constant 0 : index
    %c0_24 = arith.constant 0 : index
    %31 = vector.load %arg10[%c0_23, %c0_24] : memref<512x4xf32, #tpu.memory_space<vmem>>, vector<512x4xf32>
    tpu.vector_store %arg10[%c0_23, %c0_24], %30 {strides = array<i32>} : memref<512x4xf32, #tpu.memory_space<vmem>>, vector<512x4xf32>,
    return
  }
  func.func @transform_0(%arg0: i32) -> (i32, i32) {
    %c0_i32 = arith.constant 0 : i32
    %c0_i32_0 = arith.constant 0 : i32
    return %arg0, %c0_i32 : i32, i32
  }
  func.func @transform_1(%arg0: i32) -> (i32, i32) {
    %c0_i32 = arith.constant 0 : i32
    %c0_i32_0 = arith.constant 0 : i32
    %c0_i32_1 = arith.constant 0 : i32
    return %c0_i32, %c0_i32_0 : i32, i32
  }
  func.func @transform_2(%arg0: i32) -> (i32, i32) {
    %c0_i32 = arith.constant 0 : i32
    %c0_i32_0 = arith.constant 0 : i32
    %c0_i32_1 = arith.constant 0 : i32
    return %c0_i32, %c0_i32_0 : i32, i32
  }
  func.func @transform_3(%arg0: i32) -> (i32, i32) {
    %c0_i32 = arith.constant 0 : i32
    %c0_i32_0 = arith.constant 0 : i32
    %c0_i32_1 = arith.constant 0 : i32
    return %c0_i32, %c0_i32_0 : i32, i32
  }
  func.func @transform_4(%arg0: i32) -> (i32, i32) {
    %c0_i32 = arith.constant 0 : i32
    %c0_i32_0 = arith.constant 0 : i32
    %c0_i32_1 = arith.constant 0 : i32
    return %c0_i32, %c0_i32_0 : i32, i32
  }
  func.func @transform_5(%arg0: i32) -> (i32, i32) {
    %c0_i32 = arith.constant 0 : i32
    %c0_i32_0 = arith.constant 0 : i32
    %c0_i32_1 = arith.constant 0 : i32
    return %c0_i32, %c0_i32_0 : i32, i32
  }
  func.func @transform_6(%arg0: i32) -> (i32, i32) {
    %c0_i32 = arith.constant 0 : i32
    %c0_i32_0 = arith.constant 0 : i32
    %c0_i32_1 = arith.constant 0 : i32
    return %c0_i32, %c0_i32_0 : i32, i32
  }
  func.func @transform_7(%arg0: i32) -> (i32, i32) {
    %c0_i32 = arith.constant 0 : i32
    %c0_i32_0 = arith.constant 0 : i32
    %c0_i32_1 = arith.constant 0 : i32
    return %c0_i32, %c0_i32_0 : i32, i32
  }
  func.func @transform_8(%arg0: i32) -> (i32, i32) {
    %c0_i32 = arith.constant 0 : i32
    %c0_i32_0 = arith.constant 0 : i32
    %c0_i32_1 = arith.constant 0 : i32
    return %c0_i32, %c0_i32_0 : i32, i32
  }
  func.func @transform_9(%arg0: i32) -> (i32, i32) {
    %c0_i32 = arith.constant 0 : i32
    %c0_i32_0 = arith.constant 0 : i32
    return %arg0, %c0_i32 : i32, i32
  }
}

</mosaic_0001>

<bundles_post_ra>
// kernel: tpu_custom_call.1
= control target key start
LH: loop header
LB: loop body
LE: loop exit
PB: predicated region body
PF: predicated region fallthrough
CT: control target
= control target key end

     0   :  { %s3597_s30 = smov 0   ;;  %s3599_s10 = smov 0   ;;  %s4426_s0 = inlined_call_operand.vmem [shape: f32[1000,39], index: 0, kind: input, shape index: {}]   ;;  %s4427_s1 = inlined_call_operand.vmem [shape: bf16[39,128], index: 1, kind: input, shape index: {}]   ;;  %s4428_s2 = inlined_call_operand.vmem [shape: f32[1,128], index: 2, kind: input, shape index: {}]   ;;  %s4429_s3 = inlined_call_operand.vmem [shape: bf16[128,128], index: 3, kind: input, shape index: {}]   ;;  %s4430_s4 = inlined_call_operand.vmem [shape: f32[1,128], index: 4, kind: input, shape index: {}]   ;;  %s4431_s5 = inlined_call_operand.vmem [shape: bf16[128,128], index: 5, kind: input, shape index: {}]   ;;  %s4432_s6 = inlined_call_operand.vmem [shape: f32[1,128], index: 6, kind: input, shape index: {}]   ;;  %s4433_s7 = inlined_call_operand.vmem [shape: bf16[128,4], index: 7, kind: input, shape index: {}]   ;;  %s4434_s8 = inlined_call_operand.vmem [shape: f32[1,4], index: 8, kind: input, shape index: {}]   ;;  %s4435_s9 = inlined_call_operand.vmem [shape: f32[1000,4], index: 9, kind: output, shape index: {}]  }
   0x1   :  { %s3601_s11 = smov 0  }
   0x2 LB: > { %s3610_s12 = sadd.s32 4294967295, %s3512_s11   ;;  %s3612_s13 = sadd.s32 1, %s3512_s11   ;;  %s3512_s11 = sphi %s3601_s11, %s4444_s11   ;;  %s3508_s10 = sphi %s3599_s10, %s4443_s10   ;;  %s3504_s30 = sphi %s3597_s30, %s4442_s30  }
   0x3   : > { %s217_s14 = ssub.s32 %s3512_s11, %s3612_s13  ;;  %s220_s15 = sadd.s32 1, %s3508_s10 }
   0x4   : > { %p218_p0 = scmp.eq.s32.totalorder %s217_s14, 0  ;;  %p230_p1 = scmp.ne.s32.totalorder %s3508_s10, %s3504_s30 }
   0x5   : > { %p231_p2 = scmp.eq.s32.totalorder %s3610_s12, 1  ;;  %p2774_p3 = scmp.ge.s32.totalorder %s3512_s11, 1 }
   0x6   : > { %s3620_s16 = scalar_select %p218_p0, %s3508_s10, %s220_s15  }
   0x7   : > { %p3622_p4 = por %p231_p2, %p230_p1  ;;  %p296_p5 = scmp.lt.s32.totalorder %s3512_s11, 3 }
   0x9   : > { %p297_p6 = pnand %p2774_p3, %p296_p5 }
   0xa   : > { %v3431_v0 = vld [vmem:[%s4427_s1] sm:$0xff] (!%p297_p6)   ;;  %vm575_vm0 = vcmask (!%p297_p6), 1042432   ;;  %v3432_v1 = vld [vmem:[%s4427_s1 + $0x8] sm:$0xff] (!%p297_p6)   ;;  %vm576_vm1 = vcmask (!%p297_p6), 1043456   ;;  %v3433_v2 = vld [vmem:[%s4427_s1 + $0x10] ss:$0 sps:$4 sm:$0xff] (!%p297_p6)  }
   0xb   : > { %300 = sbr.rel (%p297_p6) target bundleno = 1102 (0x44e), region = 56  ;;  %3016 = vmatprep.subr.bf16.mxu0 (!%p297_p6), %v3431_v0  ;;  %s3636_s24 = sshll.u32 (!%p297_p6), %s3610_s12, 6  ;;  %v3546_v3 = vmov (!%p297_p6), 65535   ;;  %v3434_v7 = vld [vmem:[%s4429_s3] sm:$0xff] (!%p297_p6)   ;;  %v3435_v8 = vld [vmem:[%s4429_s3 + $0x8] sm:$0xff] (!%p297_p6)   ;;  %v3436_v9 = vld [vmem:[%s4429_s3 + $0x10] sm:$0xff] (!%p297_p6)  }
   0xc   : > { %3017 = vmatpush3.bf16.msra.mxu0 (!%p297_p6), %v3431_v0  ;;  %v577_v4 = vsel (!%p297_p6), %vm575_vm0, 4294967295, %v3546_v3  ;;  %p340_p7 = scmp.lt.s32.totalorder (!%p297_p6), %s3636_s24, 124  ;;  %3086 = vmatprep.subr.bf16.mxu1 (!%p297_p6), %v3434_v7  ;;  %vm478_vm2 = vcmask (!%p297_p6), 318464   ;;  %v3437_v19 = vld [vmem:[%s4429_s3 + $0x18] sm:$0xff] (!%p297_p6)   ;;  %v3438_v36 = vld [vmem:[%s4429_s3 + $0x20] sm:$0xff] (!%p297_p6)   ;;  %v3439_v37 = vld [vmem:[%s4429_s3 + $0x28] sm:$0xff] (!%p297_p6)  }
   0xd   : > { %3018 = vmatprep.subr.bf16.mxu0 (!%p297_p6), %v3432_v1  ;;  %v578_v5 = vsel (!%p297_p6), %vm576_vm1, %v577_v4, 0  ;;  %3087 = vmatpush3.bf16.msra.mxu1 (!%p297_p6), %v3434_v7  ;;  %s332_s28 = sand.u32 (!%p297_p6), 1, %s3504_s30   ;;  %vm2239_vm3 = vcmask (!%p297_p6), 31744  }
   0xe   : > { %v580_v6 = vand.u32 (!%p297_p6), %v3433_v2, %v578_v5  ;;  %3088 = vmatprep.subr.bf16.mxu1 (!%p297_p6), %v3435_v8  ;;  %s2775_s29 = sshll.u32 (!%p297_p6), %s332_s28, 9 }
   0xf   : > { %s4028_s15 = scalar_lea.vmem (!%p297_p6), [#allocation2], %s2775_s29  }
  0x10   : > { %3019 = vmatpush3.bf16.msra.mxu0 (!%p297_p6), %v3432_v1 }
  0x11   : > { %3020 = vmatprep.subr.bf16.mxu0 (!%p297_p6), %v580_v6  ;;  %3089 = vmatpush3.bf16.msra.mxu1 (!%p297_p6), %v3435_v8 }
  0x12   : > { %s341_s25 = scalar_select %p340_p7, %s3636_s24, 124  ;;  %3090 = vmatprep.subr.bf16.mxu1 %v3436_v9 }
  0x13   : > { %s2312_s30 = ssub.s32 (%p3622_p4), 125, %s3636_s24  ;;  %s2858_s19 = sshll.u32 (%p3622_p4), %s3610_s12, 9 }
  0x14   : > { %s2777_s11 = sshll.u32 %s341_s25, 3  ;;  %3021 = vmatpush3.bf16.msra.mxu0 %v580_v6  ;;  %p2313_p8 = scmp.lt.s32.totalorder (%p3622_p4), %s2312_s30, 64 }
  0x15   : > { %s3649_s18 = scalar_lea.vmem %s4426_s0, %s2777_s11  ;;  %3091 = vmatpush3.bf16.msra.mxu1 %v3436_v9  ;;  %s4227_s22 = scalar_lea.vmem (%p3622_p4), %s4435_s9, %s2858_s19  }
  0x16   : > { %v355_v10 = vld [vmem:[%s3649_s18] sm:$0xff]  ;;  %v356_v11 = vld [vmem:[%s3649_s18 + $0x8] sm:$0xff]  ;;  %v357_v12 = vld [vmem:[%s3649_s18 + $0x10] sm:$0xff]  ;;  %3092 = vmatprep.subr.bf16.mxu1 %v3437_v19 }
  0x17   : > { %v419_v13 = vpack.c.bf16 %v356_v11, %v355_v10  ;;  %v358_v14 = vld [vmem:[%s3649_s18 + $0x18] sm:$0xff]  ;;  %v359_v15 = vld [vmem:[%s3649_s18 + $0x20] sm:$0xff]  ;;  %v360_v16 = vld [vmem:[%s3649_s18 + $0x28] sm:$0xff] }
  0x18   : > { %v420_v17 = vpack.c.bf16 %v358_v14, %v357_v12  ;;  %v421_v18 = vpack.c.bf16 %v360_v16, %v359_v15  ;;  %v361_v20 = vld [vmem:[%s3649_s18 + $0x30] sm:$0xff]  ;;  %v362_v21 = vld [vmem:[%s3649_s18 + $0x38] sm:$0xff]  ;;  %v363_v22 = vld [vmem:[%s3649_s18 + $0x40] sm:$0xff] }
  0x19   : > { %3022 = vmatprep.mubr.msk.bf16.mxu0 %vm478_vm2, %v419_v13  ;;  %v364_v23 = vld [vmem:[%s3649_s18 + $0x48] sm:$0xff]  ;;  %v422_v24 = vpack.c.bf16 %v362_v21, %v361_v20  ;;  %3093 = vmatpush3.bf16.msra.mxu1 %v3437_v19  ;;  %v365_v26 = vld [vmem:[%s3649_s18 + $0x50] sm:$0xff]  ;;  %v366_v27 = vld [vmem:[%s3649_s18 + $0x58] sm:$0xff] }
  0x1a   : > { %3023 = vmatmul.mubr.msk.bf16.vlgmr.msra.gmra.mrb[0].mxu0 %vm478_vm2, %v420_v17  ;;  %v423_v25 = vpack.c.bf16 %v364_v23, %v363_v22  ;;  %v367_v28 = vld [vmem:[%s3649_s18 + $0x60] sm:$0xff]  ;;  %v368_v29 = vld [vmem:[%s3649_s18 + $0x68] sm:$0xff]  ;;  %v424_v30 = vpack.c.bf16 %v366_v27, %v365_v26  ;;  %v369_v32 = vld [vmem:[%s3649_s18 + $0x70] sm:$0xff]  ;;  %3094 = vmatprep.subr.bf16.mxu1 %v3438_v36 }
  0x1b   : > { %3026 = vmatprep.mubr.msk.bf16.mxu0 %vm478_vm2, %v421_v18  ;;  %v425_v31 = vpack.c.bf16 %v368_v29, %v367_v28  ;;  %v370_v33 = vld [vmem:[%s3649_s18 + $0x78] sm:$0xff]  ;;  %v371_v34 = vld [vmem:[%s3649_s18 + $0x80] sm:$0xff]  ;;  %v372_v35 = vld [vmem:[%s3649_s18 + $0x88] sm:$0xff] }
  0x1c   : > { %v426_v38 = vpack.c.bf16 %v370_v33, %v369_v32  ;;  %v427_v39 = vpack.c.bf16 %v372_v35, %v371_v34  ;;  %v373_v40 = vld [vmem:[%s3649_s18 + $0x90] sm:$0xff]  ;;  %v374_v41 = vld [vmem:[%s3649_s18 + $0x98] sm:$0xff]  ;;  %v375_v42 = vld [vmem:[%s3649_s18 + $0xa0] sm:$0xff] }
  0x1d   : > { %3095 = vmatpush3.bf16.msra.mxu1 %v3438_v36  ;;  %v376_v43 = vld [vmem:[%s3649_s18 + $0xa8] sm:$0xff]  ;;  %v428_v44 = vpack.c.bf16 %v374_v41, %v373_v40  ;;  %v377_v46 = vld [vmem:[%s3649_s18 + $0xb0] sm:$0xff]  ;;  %v378_v47 = vld [vmem:[%s3649_s18 + $0xb8] sm:$0xff] }
  0x1e   : > { %3096 = vmatprep.subr.bf16.mxu1 %v3439_v37  ;;  %v429_v45 = vpack.c.bf16 %v376_v43, %v375_v42  ;;  %v379_v48 = vld [vmem:[%s3649_s18 + $0xc0] sm:$0xff]  ;;  %v380_v49 = vld [vmem:[%s3649_s18 + $0xc8] sm:$0xff]  ;;  %v430_v50 = vpack.c.bf16 %v378_v47, %v377_v46  ;;  %v381_v52 = vld [vmem:[%s3649_s18 + $0xd0] sm:$0xff] }
  0x1f   : > { %v431_v51 = vpack.c.bf16 %v380_v49, %v379_v48  ;;  %v382_v53 = vld [vmem:[%s3649_s18 + $0xd8] sm:$0xff]  ;;  %v383_v54 = vld [vmem:[%s3649_s18 + $0xe0] sm:$0xff]  ;;  %v384_v55 = vld [vmem:[%s3649_s18 + $0xe8] sm:$0xff] }
  0x20   : > { %v432_v56 = vpack.c.bf16 %v382_v53, %v381_v52  ;;  %v433_v57 = vpack.c.bf16 %v384_v55, %v383_v54  ;;  %v385_v58 = vld [vmem:[%s3649_s18 + $0xf0] sm:$0xff]  ;;  %v386_v59 = vld [vmem:[%s3649_s18 + $0xf8] sm:$0xff]  ;;  %v387_v60 = vld [vmem:[%s3649_s18 + $0x100] sm:$0xff] }
  0x21   : > { %3097 = vmatpush3.bf16.msra.mxu1 %v3439_v37  ;;  %v388_v61 = vld [vmem:[%s3649_s18 + $0x108] sm:$0xff]  ;;  %v434_v62 = vpack.c.bf16 %v386_v59, %v385_v58  ;;  %v389_v0 = vld [vmem:[%s3649_s18 + $0x110] sm:$0xff]  ;;  %v390_v1 = vld [vmem:[%s3649_s18 + $0x118] sm:$0xff] }
  0x22   : > { %3027 = vmatmul.mubr.msk.bf16.gmra.mrb[4].mxu0 %vm478_vm2, %v422_v24  ;;  %v435_v63 = vpack.c.bf16 %v388_v61, %v387_v60  ;;  %v391_v2 = vld [vmem:[%s3649_s18 + $0x120] sm:$0xff]  ;;  %v392_v3 = vld [vmem:[%s3649_s18 + $0x128] sm:$0xff]  ;;  %v436_v4 = vpack.c.bf16 %v390_v1, %v389_v0  ;;  %v393_v6 = vld [vmem:[%s3649_s18 + $0x130] sm:$0xff] }
  0x23   : > { %3030 = vmatprep.mubr.msk.bf16.mxu0 %vm478_vm2, %v423_v25  ;;  %v437_v5 = vpack.c.bf16 %v392_v3, %v391_v2  ;;  %v394_v7 = vld [vmem:[%s3649_s18 + $0x138] sm:$0xff]  ;;  %v395_v8 = vld [vmem:[%s3649_s18 + $0x140] sm:$0xff]  ;;  %v396_v9 = vld [vmem:[%s3649_s18 + $0x148] sm:$0xff] }
  0x24   : > { %v438_v10 = vpack.c.bf16 %v394_v7, %v393_v6  ;;  %v439_v11 = vpack.c.bf16 %v396_v9, %v395_v8  ;;  %v397_v12 = vld [vmem:[%s3649_s18 + $0x150] sm:$0xff]  ;;  %v398_v13 = vld [vmem:[%s3649_s18 + $0x158] sm:$0xff]  ;;  %v399_v14 = vld [vmem:[%s3649_s18 + $0x160] sm:$0xff] }
  0x25   : > { %v400_v15 = vld [vmem:[%s3649_s18 + $0x168] sm:$0xff]  ;;  %v440_v16 = vpack.c.bf16 %v398_v13, %v397_v12  ;;  %v401_v18 = vld [vmem:[%s3649_s18 + $0x170] sm:$0xff]  ;;  %v402_v19 = vld [vmem:[%s3649_s18 + $0x178] sm:$0xff] }
  0x26   : > { %v441_v17 = vpack.c.bf16 %v400_v15, %v399_v14  ;;  %v403_v20 = vld [vmem:[%s3649_s18 + $0x180] sm:$0xff]  ;;  %v404_v21 = vld [vmem:[%s3649_s18 + $0x188] sm:$0xff]  ;;  %v442_v22 = vpack.c.bf16 %v402_v19, %v401_v18  ;;  %v3440_v23 = vld [vmem:[%s4429_s3 + $0x30] sm:$0xff]  }
  0x27   : > { %v443_v24 = vpack.c.bf16 %v404_v21, %v403_v20  ;;  %3098 = vmatprep.subr.bf16.mxu1 %v3440_v23  ;;  %v3441_v25 = vld [vmem:[%s4429_s3 + $0x38] sm:$0xff]   ;;  %v405_v26 = vld [vmem:[%s3649_s18 + $0x190] sm:$0xff]  ;;  %v407_v28 = vld [vmem:[%s3649_s18 + $0x1a0] sm:$0xff] }
  0x28   : > { %3099 = vmatpush3.bf16.msra.mxu1 %v3440_v23  ;;  %v406_v27 = vld [vmem:[%s3649_s18 + $0x198] sm:$0xff]  ;;  %v408_v29 = vld [vmem:[%s3649_s18 + $0x1a8] sm:$0xff]  ;;  %v409_v32 = vld [vmem:[%s3649_s18 + $0x1b0] sm:$0xff] }
  0x29   : > { %3100 = vmatprep.subr.bf16.mxu1 %v3441_v25  ;;  %v410_v33 = vld [vmem:[%s3649_s18 + $0x1b8] sm:$0xff]  ;;  %v411_v34 = vld [vmem:[%s3649_s18 + $0x1c0] sm:$0xff]  ;;  %v412_v35 = vld [vmem:[%s3649_s18 + $0x1c8] sm:$0xff] }
  0x2a   : > { %3031 = vmatmul.mubr.msk.bf16.gmra.mrb[8].mxu0 %vm478_vm2, %v424_v30  ;;  %v444_v30 = vpack.c.bf16 %v406_v27, %v405_v26  ;;  %v446_v36 = vpack.c.bf16 %v410_v33, %v409_v32  ;;  %v447_v37 = vpack.c.bf16 %v412_v35, %v411_v34  ;;  %v415_v40 = vld [vmem:[%s3649_s18 + $0x1e0] sm:$0xff]  ;;  %v416_v41 = vld [vmem:[%s3649_s18 + $0x1e8] sm:$0xff]  ;;  %v3445_v58 = vld [vmem:[%s4431_s5 + $0x18] sm:$0xff]  }
  0x2b   : > { %3034 = vmatprep.mubr.msk.bf16.mxu0 %vm478_vm2, %v425_v31  ;;  %v445_v31 = vpack.c.bf16 %v408_v29, %v407_v28  ;;  %v449_v43 = vpack.c.bf16 %v416_v41, %v415_v40  ;;  %v3442_v47 = vld [vmem:[%s4431_s5] sm:$0xff]   ;;  %v3443_v48 = vld [vmem:[%s4431_s5 + $0x8] sm:$0xff]   ;;  %v3449_v26 = vld [vmem:[%s4431_s5 + $0x38] sm:$0xff]  }
  0x2c   : > { %3101 = vmatpush3.bf16.msra.mxu1 %v3441_v25  ;;  %3166 = vmatprep.subr.bf16.mxu0 %v3442_v47  ;;  %v3774_v49 = vld [vmem:[%s4428_s2] ss:$0 sm:$0xff] }
  0x2d   : > { %3167 = vmatpush3.bf16.msra.mxu0 %v3442_v47  ;;  %v3446_v1 = vld [vmem:[%s4431_s5 + $0x20] sm:$0xff]  }
  0x2e   : > { %3168 = vmatprep.subr.bf16.mxu0 %v3443_v48 }
  0x31   : > { %3169 = vmatpush3.bf16.msra.mxu0 %v3443_v48 }
  0x32   : > { %3035 = vmatmul.mubr.msk.bf16.gmra.mrb[12].mxu0 %vm478_vm2, %v426_v38  ;;  %v413_v38 = vld [vmem:[%s3649_s18 + $0x1d0] sm:$0xff] }
  0x33   : > { %3038 = vmatprep.mubr.msk.bf16.mxu0 %vm478_vm2, %v427_v39  ;;  %v414_v39 = vld [vmem:[%s3649_s18 + $0x1d8] sm:$0xff] }
  0x34   : > { %v448_v42 = vpack.c.bf16 %v414_v39, %v413_v38 }
  0x3a   : > { %3039 = vmatmul.mubr.msk.bf16.gmra.mrb[16].mxu0 %vm478_vm2, %v428_v44  ;;  %v417_v44 = vld [vmem:[%s3649_s18 + $0x1f0] sm:$0xff] }
  0x3b   : > { %3042 = vmatprep.mubr.msk.bf16.mxu0 %vm478_vm2, %v429_v45  ;;  %v418_v45 = vld [vmem:[%s3649_s18 + $0x1f8] sm:$0xff] }
  0x3c   : > { %v450_v46 = vpack.c.bf16 %v418_v45, %v417_v44 }
  0x42   : > { %3043 = vmatmul.mubr.msk.bf16.gmra.mrb[20].mxu0 %vm478_vm2, %v430_v50 }
  0x43   : > { %3046 = vmatprep.mubr.msk.bf16.mxu0 %vm478_vm2, %v431_v51 }
  0x4a   : > { %3047 = vmatmul.mubr.msk.bf16.gmra.mrb[24].mxu0 %vm478_vm2, %v432_v56 }
  0x4b   : > { %3050 = vmatprep.mubr.msk.bf16.mxu0 %vm478_vm2, %v433_v57  ;;  %v3444_v57 = vld [vmem:[%s4431_s5 + $0x10] sm:$0xff]  }
  0x4c   : > { %3170 = vmatprep.subr.bf16.mxu0 %v3444_v57 }
  0x4d   : > { %3171 = vmatpush3.bf16.msra.mxu0 %v3444_v57 }
  0x4e   : > { %3172 = vmatprep.subr.bf16.mxu0 %v3445_v58 }
  0x51   : > { %3173 = vmatpush3.bf16.msra.mxu0 %v3445_v58 }
  0x52   : > { %3051 = vmatmul.mubr.msk.bf16.gmra.mrb[28].mxu0 %vm478_vm2, %v434_v62  ;;  %3174 = vmatprep.subr.bf16.mxu0 %v3446_v1 }
  0x53   : > { %3054 = vmatprep.mubr.msk.bf16.mxu0 %vm478_vm2, %v435_v63 }
  0x55   : > { %3175 = vmatpush3.bf16.msra.mxu0 %v3446_v1 }
  0x5a   : > { %3055 = vmatmul.mubr.msk.bf16.gmra.mrb[32].mxu0 %vm478_vm2, %v436_v4 }
  0x5b   : > { %3058 = vmatprep.mubr.msk.bf16.mxu0 %vm478_vm2, %v437_v5 }
  0x62   : > { %3059 = vmatmul.mubr.msk.bf16.gmra.mrb[36].mxu0 %vm478_vm2, %v438_v10  ;;  %v3447_v10 = vld [vmem:[%s4431_s5 + $0x28] sm:$0xff]  }
  0x63   : > { %3062 = vmatprep.mubr.msk.bf16.mxu0 %vm478_vm2, %v439_v11  ;;  %3176 = vmatprep.subr.bf16.mxu0 %v3447_v10 }
  0x64   : > { %3177 = vmatpush3.bf16.msra.mxu0 %v3447_v10 }
  0x6a   : > { %3063 = vmatmul.mubr.msk.bf16.gmra.mrb[40].mxu0 %vm478_vm2, %v440_v16 }
  0x6b   : > { %3066 = vmatprep.mubr.msk.bf16.mxu0 %vm478_vm2, %v441_v17  ;;  %v3448_v17 = vld [vmem:[%s4431_s5 + $0x30] sm:$0xff]  }
  0x6c   : > { %3178 = vmatprep.subr.bf16.mxu0 %v3448_v17 }
  0x6d   : > { %3179 = vmatpush3.bf16.msra.mxu0 %v3448_v17 }
  0x6e   : > { %3180 = vmatprep.subr.bf16.mxu0 %v3449_v26 }
  0x71   : > { %3181 = vmatpush3.bf16.msra.mxu0 %v3449_v26 }
  0x72   : > { %3067 = vmatmul.mubr.msk.bf16.gmra.mrb[44].mxu0 %vm478_vm2, %v442_v22 }
  0x73   : > { %3070 = vmatprep.mubr.msk.bf16.mxu0 %vm478_vm2, %v443_v24 }
  0x7a   : > { %3071 = vmatmul.mubr.msk.bf16.gmra.mrb[48].mxu0 %vm478_vm2, %v444_v30 }
  0x7b   : > { %3074 = vmatprep.mubr.msk.bf16.mxu0 %vm478_vm2, %v445_v31 }
  0x82   : > { %3075 = vmatmul.mubr.msk.bf16.gmra.mrb[52].mxu0 %vm478_vm2, %v446_v36 }
  0x83   : > { %3078 = vmatprep.mubr.msk.bf16.mxu0 %vm478_vm2, %v447_v37 }
  0x8a   : > { %3079 = vmatmul.mubr.msk.bf16.gmra.mrb[56].mxu0 %vm478_vm2, %v448_v42 }
  0x8b   : > { %3082 = vmatprep.mubr.msk.bf16.mxu0 %vm478_vm2, %v449_v43 }
  0x92   : > { %3083 = vmatmul.mubr.msk.bf16.gmra.mrb[60].mxu0 %vm478_vm2, %v450_v46 }
  0xed   : > { %v3024_v50 = vpop.f32.mrb[0].mxu0 }
  0xee   : > { %v625_v51 = vadd.f32 %v3024_v50, %v3774_v49  ;;  %v616_v52 = vpop.f32.mrb[1].mxu0 }
  0xef   : > { %v617_v53 = vadd.f32 %v3774_v49, %v616_v52  ;;  %v3025_v54 = vpop.f32.mrb[2].mxu0 }
  0xf0   : > { %v628_v55 = vadd.f32 %v3025_v54, %v3774_v49  ;;  %v619_v56 = vpop.f32.mrb[3].mxu0  ;;  %v873_v60 = vmax.f32 %v625_v51, 0.0 }
  0xf1   : > { %v620_v59 = vadd.f32 %v3774_v49, %v619_v56  ;;  %v871_v62 = vmax.f32 %v617_v53, 0.0 }
  0xf2   : > { %v874_v61 = vmax.f32 %v628_v55, 0.0 }
  0xf3   : > { %v872_v63 = vmax.f32 %v620_v59, 0.0 }
  0xf4   : > { %v936_v0 = vpack.c.bf16 %v874_v61, %v873_v60 }
  0xf5   : > { %v3028_v2 = vpop.f32.mrb[4].mxu0  ;;  %v935_v3 = vpack.c.bf16 %v872_v63, %v871_v62 }
  0xf6   : > { %v641_v4 = vadd.f32 %v3028_v2, %v3774_v49  ;;  %v632_v5 = vpop.f32.mrb[5].mxu0 }
  0xf7   : > { %v633_v6 = vadd.f32 %v3774_v49, %v632_v5  ;;  %v3029_v7 = vpop.f32.mrb[6].mxu0  ;;  %3102 = vmatprep.mubr.bf16.mxu1 %v935_v3 }
  0xf8   : > { %v644_v8 = vadd.f32 %v3029_v7, %v3774_v49  ;;  %v635_v9 = vpop.f32.mrb[7].mxu0  ;;  %3103 = vmatmul.mubr.bf16.vlgmr.msra.gmra.mrb[0].mxu1 %v936_v0  ;;  %v877_v12 = vmax.f32 %v641_v4, 0.0 }
  0xf9   : > { %v636_v11 = vadd.f32 %v3774_v49, %v635_v9  ;;  %v875_v14 = vmax.f32 %v633_v6, 0.0 }
  0xfa   : > { %v878_v13 = vmax.f32 %v644_v8, 0.0 }
  0xfb   : > { %v876_v15 = vmax.f32 %v636_v11, 0.0 }
  0xfc   : > { %v938_v16 = vpack.c.bf16 %v878_v13, %v877_v12 }
  0xfd   : > { %v937_v18 = vpack.c.bf16 %v876_v15, %v875_v14  ;;  %v3032_v19 = vpop.f32.mrb[8].mxu0 }
  0xfe   : > { %v657_v20 = vadd.f32 %v3032_v19, %v3774_v49  ;;  %v648_v21 = vpop.f32.mrb[9].mxu0 }
  0xff   : > { %v649_v22 = vadd.f32 %v3774_v49, %v648_v21  ;;  %v3033_v23 = vpop.f32.mrb[10].mxu0  ;;  %3106 = vmatprep.mubr.bf16.mxu1 %v937_v18 }
 0x100   : > { %v660_v24 = vadd.f32 %v3033_v23, %v3774_v49  ;;  %v651_v25 = vpop.f32.mrb[11].mxu0  ;;  %3107 = vmatmul.mubr.bf16.gmra.mrb[4].mxu1 %v938_v16  ;;  %v881_v28 = vmax.f32 %v657_v20, 0.0 }
 0x101   : > { %v652_v27 = vadd.f32 %v3774_v49, %v651_v25  ;;  %v879_v30 = vmax.f32 %v649_v22, 0.0 }
 0x102   : > { %v882_v29 = vmax.f32 %v660_v24, 0.0 }
 0x103   : > { %v880_v31 = vmax.f32 %v652_v27, 0.0 }
 0x104   : > { %v940_v32 = vpack.c.bf16 %v882_v29, %v881_v28 }
 0x105   : > { %v939_v33 = vpack.c.bf16 %v880_v31, %v879_v30  ;;  %v3036_v34 = vpop.f32.mrb[12].mxu0 }
 0x106   : > { %v673_v35 = vadd.f32 %v3036_v34, %v3774_v49  ;;  %v664_v36 = vpop.f32.mrb[13].mxu0 }
 0x107   : > { %v665_v37 = vadd.f32 %v3774_v49, %v664_v36  ;;  %v3037_v38 = vpop.f32.mrb[14].mxu0  ;;  %3110 = vmatprep.mubr.bf16.mxu1 %v939_v33 }
 0x108   : > { %v676_v39 = vadd.f32 %v3037_v38, %v3774_v49  ;;  %v667_v40 = vpop.f32.mrb[15].mxu0  ;;  %3111 = vmatmul.mubr.bf16.gmra.mrb[8].mxu1 %v940_v32  ;;  %v885_v42 = vmax.f32 %v673_v35, 0.0 }
 0x109   : > { %v668_v41 = vadd.f32 %v3774_v49, %v667_v40  ;;  %v883_v44 = vmax.f32 %v665_v37, 0.0 }
 0x10a   : > { %v886_v43 = vmax.f32 %v676_v39, 0.0 }
 0x10b   : > { %v884_v45 = vmax.f32 %v668_v41, 0.0 }
 0x10c   : > { %v942_v46 = vpack.c.bf16 %v886_v43, %v885_v42 }
 0x10d   : > { %v941_v47 = vpack.c.bf16 %v884_v45, %v883_v44  ;;  %v3040_v48 = vpop.f32.mrb[16].mxu0 }
 0x10e   : > { %v689_v50 = vadd.f32 %v3040_v48, %v3774_v49  ;;  %v680_v51 = vpop.f32.mrb[17].mxu0 }
 0x10f   : > { %v681_v52 = vadd.f32 %v3774_v49, %v680_v51  ;;  %v3041_v53 = vpop.f32.mrb[18].mxu0  ;;  %3114 = vmatprep.mubr.bf16.mxu1 %v941_v47 }
 0x110   : > { %v692_v54 = vadd.f32 %v3041_v53, %v3774_v49  ;;  %v683_v55 = vpop.f32.mrb[19].mxu0  ;;  %3115 = vmatmul.mubr.bf16.gmra.mrb[12].mxu1 %v942_v46  ;;  %v889_v57 = vmax.f32 %v689_v50, 0.0 }
 0x111   : > { %v684_v56 = vadd.f32 %v3774_v49, %v683_v55  ;;  %v887_v59 = vmax.f32 %v681_v52, 0.0 }
 0x112   : > { %v890_v58 = vmax.f32 %v692_v54, 0.0 }
 0x113   : > { %v888_v60 = vmax.f32 %v684_v56, 0.0 }
 0x114   : > { %v944_v61 = vpack.c.bf16 %v890_v58, %v889_v57 }
 0x115   : > { %v943_v62 = vpack.c.bf16 %v888_v60, %v887_v59  ;;  %v3044_v63 = vpop.f32.mrb[20].mxu0 }
 0x116   : > { %v705_v0 = vadd.f32 %v3044_v63, %v3774_v49  ;;  %v696_v1 = vpop.f32.mrb[21].mxu0 }
 0x117   : > { %v697_v2 = vadd.f32 %v3774_v49, %v696_v1  ;;  %v3045_v3 = vpop.f32.mrb[22].mxu0  ;;  %3118 = vmatprep.mubr.bf16.mxu1 %v943_v62 }
 0x118   : > { %v708_v4 = vadd.f32 %v3045_v3, %v3774_v49  ;;  %v699_v5 = vpop.f32.mrb[23].mxu0  ;;  %3119 = vmatmul.mubr.bf16.gmra.mrb[16].mxu1 %v944_v61  ;;  %v893_v7 = vmax.f32 %v705_v0, 0.0 }
 0x119   : > { %v700_v6 = vadd.f32 %v3774_v49, %v699_v5  ;;  %v891_v9 = vmax.f32 %v697_v2, 0.0 }
 0x11a   : > { %v894_v8 = vmax.f32 %v708_v4, 0.0 }
 0x11b   : > { %v892_v10 = vmax.f32 %v700_v6, 0.0 }
 0x11c   : > { %v946_v11 = vpack.c.bf16 %v894_v8, %v893_v7 }
 0x11d   : > { %v945_v12 = vpack.c.bf16 %v892_v10, %v891_v9  ;;  %v3048_v13 = vpop.f32.mrb[24].mxu0 }
 0x11e   : > { %v721_v14 = vadd.f32 %v3048_v13, %v3774_v49  ;;  %v712_v15 = vpop.f32.mrb[25].mxu0 }
 0x11f   : > { %v713_v16 = vadd.f32 %v3774_v49, %v712_v15  ;;  %v3049_v17 = vpop.f32.mrb[26].mxu0  ;;  %3122 = vmatprep.mubr.bf16.mxu1 %v945_v12 }
 0x120   : > { %v724_v18 = vadd.f32 %v3049_v17, %v3774_v49  ;;  %v715_v19 = vpop.f32.mrb[27].mxu0  ;;  %3123 = vmatmul.mubr.bf16.gmra.mrb[20].mxu1 %v946_v11  ;;  %v897_v21 = vmax.f32 %v721_v14, 0.0 }
 0x121   : > { %v716_v20 = vadd.f32 %v3774_v49, %v715_v19  ;;  %v895_v23 = vmax.f32 %v713_v16, 0.0 }
 0x122   : > { %v898_v22 = vmax.f32 %v724_v18, 0.0 }
 0x123   : > { %v896_v24 = vmax.f32 %v716_v20, 0.0 }
 0x124   : > { %v948_v25 = vpack.c.bf16 %v898_v22, %v897_v21 }
 0x125   : > { %v947_v26 = vpack.c.bf16 %v896_v24, %v895_v23  ;;  %v3052_v27 = vpop.f32.mrb[28].mxu0 }
 0x126   : > { %v737_v28 = vadd.f32 %v3052_v27, %v3774_v49  ;;  %v728_v29 = vpop.f32.mrb[29].mxu0 }
 0x127   : > { %v729_v30 = vadd.f32 %v3774_v49, %v728_v29  ;;  %v3053_v31 = vpop.f32.mrb[30].mxu0  ;;  %3126 = vmatprep.mubr.bf16.mxu1 %v947_v26 }
 0x128   : > { %v740_v32 = vadd.f32 %v3053_v31, %v3774_v49  ;;  %v731_v33 = vpop.f32.mrb[31].mxu0  ;;  %3127 = vmatmul.mubr.bf16.gmra.mrb[24].mxu1 %v948_v25  ;;  %v901_v35 = vmax.f32 %v737_v28, 0.0 }
 0x129   : > { %v732_v34 = vadd.f32 %v3774_v49, %v731_v33  ;;  %v899_v37 = vmax.f32 %v729_v30, 0.0 }
 0x12a   : > { %v902_v36 = vmax.f32 %v740_v32, 0.0 }
 0x12b   : > { %v900_v38 = vmax.f32 %v732_v34, 0.0 }
 0x12c   : > { %v950_v39 = vpack.c.bf16 %v902_v36, %v901_v35 }
 0x12d   : > { %v949_v40 = vpack.c.bf16 %v900_v38, %v899_v37  ;;  %v3056_v41 = vpop.f32.mrb[32].mxu0 }
 0x12e   : > { %v753_v42 = vadd.f32 %v3056_v41, %v3774_v49  ;;  %v744_v43 = vpop.f32.mrb[33].mxu0 }
 0x12f   : > { %v745_v44 = vadd.f32 %v3774_v49, %v744_v43  ;;  %v3057_v45 = vpop.f32.mrb[34].mxu0  ;;  %3130 = vmatprep.mubr.bf16.mxu1 %v949_v40 }
 0x130   : > { %v756_v46 = vadd.f32 %v3057_v45, %v3774_v49  ;;  %v747_v47 = vpop.f32.mrb[35].mxu0  ;;  %3131 = vmatmul.mubr.bf16.gmra.mrb[28].mxu1 %v950_v39  ;;  %v905_v50 = vmax.f32 %v753_v42, 0.0 }
 0x131   : > { %v748_v48 = vadd.f32 %v3774_v49, %v747_v47  ;;  %v903_v52 = vmax.f32 %v745_v44, 0.0 }
 0x132   : > { %v906_v51 = vmax.f32 %v756_v46, 0.0 }
 0x133   : > { %v904_v53 = vmax.f32 %v748_v48, 0.0 }
 0x134   : > { %v952_v54 = vpack.c.bf16 %v906_v51, %v905_v50 }
 0x135   : > { %v951_v55 = vpack.c.bf16 %v904_v53, %v903_v52  ;;  %v3060_v56 = vpop.f32.mrb[36].mxu0 }
 0x136   : > { %v769_v57 = vadd.f32 %v3060_v56, %v3774_v49  ;;  %v760_v58 = vpop.f32.mrb[37].mxu0 }
 0x137   : > { %v761_v59 = vadd.f32 %v3774_v49, %v760_v58  ;;  %v3061_v60 = vpop.f32.mrb[38].mxu0  ;;  %3134 = vmatprep.mubr.bf16.mxu1 %v951_v55 }
 0x138   : > { %v772_v61 = vadd.f32 %v3061_v60, %v3774_v49  ;;  %v763_v62 = vpop.f32.mrb[39].mxu0  ;;  %3135 = vmatmul.mubr.bf16.gmra.mrb[32].mxu1 %v952_v54  ;;  %v909_v0 = vmax.f32 %v769_v57, 0.0 }
 0x139   : > { %v764_v63 = vadd.f32 %v3774_v49, %v763_v62  ;;  %v907_v2 = vmax.f32 %v761_v59, 0.0 }
 0x13a   : > { %v910_v1 = vmax.f32 %v772_v61, 0.0 }
 0x13b   : > { %v908_v3 = vmax.f32 %v764_v63, 0.0 }
 0x13c   : > { %v954_v4 = vpack.c.bf16 %v910_v1, %v909_v0 }
 0x13d   : > { %v953_v5 = vpack.c.bf16 %v908_v3, %v907_v2  ;;  %v3064_v6 = vpop.f32.mrb[40].mxu0 }
 0x13e   : > { %v785_v7 = vadd.f32 %v3064_v6, %v3774_v49  ;;  %v776_v8 = vpop.f32.mrb[41].mxu0 }
 0x13f   : > { %v777_v9 = vadd.f32 %v3774_v49, %v776_v8  ;;  %v3065_v10 = vpop.f32.mrb[42].mxu0  ;;  %3138 = vmatprep.mubr.bf16.mxu1 %v953_v5 }
 0x140   : > { %v788_v11 = vadd.f32 %v3065_v10, %v3774_v49  ;;  %v779_v12 = vpop.f32.mrb[43].mxu0  ;;  %3139 = vmatmul.mubr.bf16.gmra.mrb[36].mxu1 %v954_v4  ;;  %v913_v14 = vmax.f32 %v785_v7, 0.0 }
 0x141   : > { %v780_v13 = vadd.f32 %v3774_v49, %v779_v12  ;;  %v911_v16 = vmax.f32 %v777_v9, 0.0 }
 0x142   : > { %v914_v15 = vmax.f32 %v788_v11, 0.0 }
 0x143   : > { %v912_v17 = vmax.f32 %v780_v13, 0.0 }
 0x144   : > { %v956_v18 = vpack.c.bf16 %v914_v15, %v913_v14 }
 0x145   : > { %v955_v19 = vpack.c.bf16 %v912_v17, %v911_v16  ;;  %v3068_v20 = vpop.f32.mrb[44].mxu0 }
 0x146   : > { %v801_v21 = vadd.f32 %v3068_v20, %v3774_v49  ;;  %v792_v22 = vpop.f32.mrb[45].mxu0 }
 0x147   : > { %v793_v23 = vadd.f32 %v3774_v49, %v792_v22  ;;  %v3069_v24 = vpop.f32.mrb[46].mxu0  ;;  %3142 = vmatprep.mubr.bf16.mxu1 %v955_v19 }
 0x148   : > { %v804_v25 = vadd.f32 %v3069_v24, %v3774_v49  ;;  %v795_v26 = vpop.f32.mrb[47].mxu0  ;;  %3143 = vmatmul.mubr.bf16.gmra.mrb[40].mxu1 %v956_v18  ;;  %v917_v28 = vmax.f32 %v801_v21, 0.0 }
 0x149   : > { %v796_v27 = vadd.f32 %v3774_v49, %v795_v26  ;;  %v915_v30 = vmax.f32 %v793_v23, 0.0 }
 0x14a   : > { %v918_v29 = vmax.f32 %v804_v25, 0.0 }
 0x14b   : > { %v916_v31 = vmax.f32 %v796_v27, 0.0  ;;  %v3450_v27 = vld [vmem:[%s4433_s7] sm:$0xff]  }
 0x14c   : > { %v958_v32 = vpack.c.bf16 %v918_v29, %v917_v28  ;;  %3326 = vmatprep.subr.bf16.mxu1 %v3450_v27  ;;  %3246 = vmatprep.subr.bf16.mxu0 %v3450_v27  ;;  %v3864_v28 = vld [vmem:[%s4430_s4] ss:$0 sm:$0xff]  ;;  %v3451_v29 = vld [vmem:[%s4433_s7 + $0x8] sm:$0xff]  }
 0x14d   : > { %v957_v33 = vpack.c.bf16 %v916_v31, %v915_v30  ;;  %v3072_v34 = vpop.f32.mrb[48].mxu0  ;;  %3334 = vmatpush3.bf16.msra.mxu1 %v3450_v27 }
 0x14e   : > { %v817_v35 = vadd.f32 %v3072_v34, %v3774_v49  ;;  %v808_v36 = vpop.f32.mrb[49].mxu0  ;;  %3327 = vmatprep.subr.bf16.mxu1 %v3451_v29 }
 0x14f   : > { %v809_v37 = vadd.f32 %v3774_v49, %v808_v36  ;;  %v3073_v38 = vpop.f32.mrb[50].mxu0  ;;  %3146 = vmatprep.mubr.bf16.mxu1 %v957_v33  ;;  %v3452_v36 = vld [vmem:[%s4433_s7 + $0x10] sm:$0xff]  }
 0x150   : > { %v820_v39 = vadd.f32 %v3073_v38, %v3774_v49  ;;  %v811_v40 = vpop.f32.mrb[51].mxu0  ;;  %3147 = vmatmul.mubr.bf16.gmra.mrb[44].mxu1 %v958_v32  ;;  %v921_v42 = vmax.f32 %v817_v35, 0.0 }
 0x151   : > { %v812_v41 = vadd.f32 %v3774_v49, %v811_v40  ;;  %v919_v44 = vmax.f32 %v809_v37, 0.0  ;;  %3335 = vmatpush3.bf16.msra.mxu1 %v3451_v29 }
 0x152   : > { %v922_v43 = vmax.f32 %v820_v39, 0.0  ;;  %3328 = vmatprep.subr.bf16.mxu1 %v3452_v36 }
 0x153   : > { %v920_v45 = vmax.f32 %v812_v41, 0.0 }
 0x154   : > { %v960_v46 = vpack.c.bf16 %v922_v43, %v921_v42  ;;  %v3453_v42 = vld [vmem:[%s4433_s7 + $0x18] sm:$0xff]  }
 0x155   : > { %v959_v47 = vpack.c.bf16 %v920_v45, %v919_v44  ;;  %v3076_v48 = vpop.f32.mrb[52].mxu0  ;;  %3336 = vmatpush3.bf16.msra.mxu1 %v3452_v36 }
 0x156   : > { %v833_v50 = vadd.f32 %v3076_v48, %v3774_v49  ;;  %v824_v51 = vpop.f32.mrb[53].mxu0  ;;  %3329 = vmatprep.subr.bf16.mxu1 %v3453_v42 }
 0x157   : > { %v825_v52 = vadd.f32 %v3774_v49, %v824_v51  ;;  %v3077_v53 = vpop.f32.mrb[54].mxu0  ;;  %3150 = vmatprep.mubr.bf16.mxu1 %v959_v47  ;;  %v3454_v51 = vld [vmem:[%s4433_s7 + $0x20] sm:$0xff]  }
 0x158   : > { %v836_v54 = vadd.f32 %v3077_v53, %v3774_v49  ;;  %v827_v55 = vpop.f32.mrb[55].mxu0  ;;  %3151 = vmatmul.mubr.bf16.gmra.mrb[48].mxu1 %v960_v46  ;;  %v925_v57 = vmax.f32 %v833_v50, 0.0 }
 0x159   : > { %v828_v56 = vadd.f32 %v3774_v49, %v827_v55  ;;  %v923_v59 = vmax.f32 %v825_v52, 0.0  ;;  %3337 = vmatpush3.bf16.msra.mxu1 %v3453_v42 }
 0x15a   : > { %v926_v58 = vmax.f32 %v836_v54, 0.0  ;;  %3330 = vmatprep.subr.bf16.mxu1 %v3454_v51 }
 0x15b   : > { %v924_v60 = vmax.f32 %v828_v56, 0.0 }
 0x15c   : > { %v962_v61 = vpack.c.bf16 %v926_v58, %v925_v57 }
 0x15d   : > { %v961_v62 = vpack.c.bf16 %v924_v60, %v923_v59  ;;  %v3080_v63 = vpop.f32.mrb[56].mxu0  ;;  %v3455_v59 = vld [vmem:[%s4433_s7 + $0x28] sm:$0xff]   ;;  %3338 = vmatpush3.bf16.msra.mxu1 %v3454_v51 }
 0x15e   : > { %v849_v0 = vadd.f32 %v3080_v63, %v3774_v49  ;;  %v840_v1 = vpop.f32.mrb[57].mxu0  ;;  %3331 = vmatprep.subr.bf16.mxu1 %v3455_v59 }
 0x15f   : > { %v841_v2 = vadd.f32 %v3774_v49, %v840_v1  ;;  %v3081_v3 = vpop.f32.mrb[58].mxu0  ;;  %3154 = vmatprep.mubr.bf16.mxu1 %v961_v62 }
 0x160   : > { %v852_v4 = vadd.f32 %v3081_v3, %v3774_v49  ;;  %v843_v5 = vpop.f32.mrb[59].mxu0  ;;  %3155 = vmatmul.mubr.bf16.gmra.mrb[52].mxu1 %v962_v61  ;;  %v929_v7 = vmax.f32 %v849_v0, 0.0  ;;  %v3456_v3 = vld [vmem:[%s4433_s7 + $0x30] sm:$0xff]  }
 0x161   : > { %v844_v6 = vadd.f32 %v3774_v49, %v843_v5  ;;  %v927_v9 = vmax.f32 %v841_v2, 0.0  ;;  %3339 = vmatpush3.bf16.msra.mxu1 %v3455_v59 }
 0x162   : > { %v930_v8 = vmax.f32 %v852_v4, 0.0  ;;  %3332 = vmatprep.subr.bf16.mxu1 %v3456_v3 }
 0x163   : > { %v928_v10 = vmax.f32 %v844_v6, 0.0 }
 0x164   : > { %v964_v11 = vpack.c.bf16 %v930_v8, %v929_v7 }
 0x165   : > { %v963_v12 = vpack.c.bf16 %v928_v10, %v927_v9  ;;  %v3084_v13 = vpop.f32.mrb[60].mxu0  ;;  %3340 = vmatpush3.bf16.msra.mxu1 %v3456_v3 }
 0x166   : > { %v865_v14 = vadd.f32 %v3084_v13, %v3774_v49  ;;  %v856_v15 = vpop.f32.mrb[61].mxu0 }
 0x167   : > { %v857_v16 = vadd.f32 %v3774_v49, %v856_v15  ;;  %v3085_v17 = vpop.f32.mrb[62].mxu0  ;;  %3158 = vmatprep.mubr.bf16.mxu1 %v963_v12 }
 0x168   : > { %v868_v18 = vadd.f32 %v3085_v17, %v3774_v49  ;;  %v859_v19 = vpop.f32.mrb[63].mxu0  ;;  %3159 = vmatmul.mubr.bf16.gmra.mrb[56].mxu1 %v964_v11  ;;  %v933_v21 = vmax.f32 %v865_v14, 0.0 }
 0x169   : > { %v860_v20 = vadd.f32 %v3774_v49, %v859_v19  ;;  %v931_v23 = vmax.f32 %v857_v16, 0.0 }
 0x16a   : > { %v934_v22 = vmax.f32 %v868_v18, 0.0 }
 0x16b   : > { %v932_v24 = vmax.f32 %v860_v20, 0.0 }
 0x16c   : > { %v966_v25 = vpack.c.bf16 %v934_v22, %v933_v21 }
 0x16d   : > { %v965_v26 = vpack.c.bf16 %v932_v24, %v931_v23 }
 0x16f   : > { %3162 = vmatprep.mubr.bf16.mxu1 %v965_v26 }
 0x170   : > { %3163 = vmatmul.mubr.bf16.gmra.mrb[60].mxu1 %v966_v25 }
 0x1cb   : > { %v3104_v49 = vpop.f32.mrb[0].mxu1 }
 0x1cc   : > { %v1081_v30 = vadd.f32 %v3104_v49, %v3864_v28  ;;  %v1072_v31 = vpop.f32.mrb[1].mxu1 }
 0x1cd   : > { %v1073_v32 = vadd.f32 %v3864_v28, %v1072_v31  ;;  %v3105_v33 = vpop.f32.mrb[2].mxu1 }
 0x1ce   : > { %v1084_v34 = vadd.f32 %v3105_v33, %v3864_v28  ;;  %v1075_v35 = vpop.f32.mrb[3].mxu1  ;;  %v1329_v38 = vmax.f32 %v1081_v30, 0.0 }
 0x1cf   : > { %v1076_v37 = vadd.f32 %v3864_v28, %v1075_v35  ;;  %v1327_v40 = vmax.f32 %v1073_v32, 0.0 }
 0x1d0   : > { %v1330_v39 = vmax.f32 %v1084_v34, 0.0 }
 0x1d1   : > { %v1328_v41 = vmax.f32 %v1076_v37, 0.0 }
 0x1d2   : > { %v1392_v43 = vpack.c.bf16 %v1330_v39, %v1329_v38 }
 0x1d3   : > { %v1391_v44 = vpack.c.bf16 %v1328_v41, %v1327_v40  ;;  %v3108_v45 = vpop.f32.mrb[4].mxu1 }
 0x1d4   : > { %v1097_v46 = vadd.f32 %v3108_v45, %v3864_v28  ;;  %v1088_v47 = vpop.f32.mrb[5].mxu1 }
 0x1d5   : > { %v1089_v48 = vadd.f32 %v3864_v28, %v1088_v47  ;;  %v3109_v50 = vpop.f32.mrb[6].mxu1  ;;  %3182 = vmatprep.mubr.bf16.mxu0 %v1391_v44 }
 0x1d6   : > { %v1100_v52 = vadd.f32 %v3109_v50, %v3864_v28  ;;  %v1091_v53 = vpop.f32.mrb[7].mxu1  ;;  %3183 = vmatmul.mubr.bf16.vlgmr.msra.gmra.mrb[64].mxu0 %v1392_v43  ;;  %v1333_v55 = vmax.f32 %v1097_v46, 0.0 }
 0x1d7   : > { %v1092_v54 = vadd.f32 %v3864_v28, %v1091_v53  ;;  %3247 = vmatpush3.bf16.msra.mxu0 %v3450_v27  ;;  %v1331_v57 = vmax.f32 %v1089_v48, 0.0 }
 0x1d8   : > { %v1334_v56 = vmax.f32 %v1100_v52, 0.0  ;;  %3248 = vmatprep.subr.bf16.mxu0 %v3451_v29 }
 0x1d9   : > { %v1332_v58 = vmax.f32 %v1092_v54, 0.0 }
 0x1da   : > { %v1394_v60 = vpack.c.bf16 %v1334_v56, %v1333_v55 }
 0x1db   : > { %v1393_v61 = vpack.c.bf16 %v1332_v58, %v1331_v57  ;;  %v3112_v62 = vpop.f32.mrb[8].mxu1  ;;  %3249 = vmatpush3.bf16.msra.mxu0 %v3451_v29 }
 0x1dc   : > { %v1113_v63 = vadd.f32 %v3112_v62, %v3864_v28  ;;  %v1104_v0 = vpop.f32.mrb[9].mxu1  ;;  %3250 = vmatprep.subr.bf16.mxu0 %v3452_v36 }
 0x1dd   : > { %v1105_v1 = vadd.f32 %v3864_v28, %v1104_v0  ;;  %v3113_v2 = vpop.f32.mrb[10].mxu1  ;;  %3186 = vmatprep.mubr.bf16.mxu0 %v1393_v61 }
 0x1de   : > { %v1116_v4 = vadd.f32 %v3113_v2, %v3864_v28  ;;  %v1107_v5 = vpop.f32.mrb[11].mxu1  ;;  %3187 = vmatmul.mubr.bf16.gmra.mrb[68].mxu0 %v1394_v60  ;;  %v1337_v7 = vmax.f32 %v1113_v63, 0.0 }
 0x1df   : > { %v1108_v6 = vadd.f32 %v3864_v28, %v1107_v5  ;;  %3251 = vmatpush3.bf16.msra.mxu0 %v3452_v36  ;;  %v1335_v9 = vmax.f32 %v1105_v1, 0.0 }
 0x1e0   : > { %v1338_v8 = vmax.f32 %v1116_v4, 0.0  ;;  %3252 = vmatprep.subr.bf16.mxu0 %v3453_v42 }
 0x1e1   : > { %v1336_v10 = vmax.f32 %v1108_v6, 0.0 }
 0x1e2   : > { %v1396_v11 = vpack.c.bf16 %v1338_v8, %v1337_v7 }
 0x1e3   : > { %v1395_v12 = vpack.c.bf16 %v1336_v10, %v1335_v9  ;;  %v3116_v13 = vpop.f32.mrb[12].mxu1  ;;  %3253 = vmatpush3.bf16.msra.mxu0 %v3453_v42 }
 0x1e4   : > { %v1129_v14 = vadd.f32 %v3116_v13, %v3864_v28  ;;  %v1120_v15 = vpop.f32.mrb[13].mxu1  ;;  %3254 = vmatprep.subr.bf16.mxu0 %v3454_v51 }
 0x1e5   : > { %v1121_v16 = vadd.f32 %v3864_v28, %v1120_v15  ;;  %v3117_v17 = vpop.f32.mrb[14].mxu1  ;;  %3190 = vmatprep.mubr.bf16.mxu0 %v1395_v12 }
 0x1e6   : > { %v1132_v18 = vadd.f32 %v3117_v17, %v3864_v28  ;;  %v1123_v19 = vpop.f32.mrb[15].mxu1  ;;  %3191 = vmatmul.mubr.bf16.gmra.mrb[72].mxu0 %v1396_v11  ;;  %v1341_v21 = vmax.f32 %v1129_v14, 0.0 }
 0x1e7   : > { %v1124_v20 = vadd.f32 %v3864_v28, %v1123_v19  ;;  %3255 = vmatpush3.bf16.msra.mxu0 %v3454_v51  ;;  %v1339_v23 = vmax.f32 %v1121_v16, 0.0 }
 0x1e8   : > { %v1342_v22 = vmax.f32 %v1132_v18, 0.0  ;;  %3256 = vmatprep.subr.bf16.mxu0 %v3455_v59 }
 0x1e9   : > { %v1340_v24 = vmax.f32 %v1124_v20, 0.0 }
 0x1ea   : > { %v1398_v25 = vpack.c.bf16 %v1342_v22, %v1341_v21 }
 0x1eb   : > { %v1397_v26 = vpack.c.bf16 %v1340_v24, %v1339_v23  ;;  %v3120_v27 = vpop.f32.mrb[16].mxu1  ;;  %3257 = vmatpush3.bf16.msra.mxu0 %v3455_v59 }
 0x1ec   : > { %v1145_v49 = vadd.f32 %v3120_v27, %v3864_v28  ;;  %v1136_v29 = vpop.f32.mrb[17].mxu1  ;;  %3258 = vmatprep.subr.bf16.mxu0 %v3456_v3 }
 0x1ed   : > { %v1137_v30 = vadd.f32 %v3864_v28, %v1136_v29  ;;  %v3121_v31 = vpop.f32.mrb[18].mxu1  ;;  %3194 = vmatprep.mubr.bf16.mxu0 %v1397_v26 }
 0x1ee   : > { %v1148_v32 = vadd.f32 %v3121_v31, %v3864_v28  ;;  %v1139_v33 = vpop.f32.mrb[19].mxu1  ;;  %3195 = vmatmul.mubr.bf16.gmra.mrb[76].mxu0 %v1398_v25  ;;  %v1345_v35 = vmax.f32 %v1145_v49, 0.0 }
 0x1ef   : > { %v1140_v34 = vadd.f32 %v3864_v28, %v1139_v33  ;;  %3259 = vmatpush3.bf16.msra.mxu0 %v3456_v3  ;;  %v1343_v37 = vmax.f32 %v1137_v30, 0.0 }
 0x1f0   : > { %v1346_v36 = vmax.f32 %v1148_v32, 0.0 }
 0x1f1   : > { %v1344_v38 = vmax.f32 %v1140_v34, 0.0 }
 0x1f2   : > { %v1400_v39 = vpack.c.bf16 %v1346_v36, %v1345_v35 }
 0x1f3   : > { %v1399_v40 = vpack.c.bf16 %v1344_v38, %v1343_v37  ;;  %v3124_v41 = vpop.f32.mrb[20].mxu1 }
 0x1f4   : > { %v1161_v42 = vadd.f32 %v3124_v41, %v3864_v28  ;;  %v1152_v43 = vpop.f32.mrb[21].mxu1 }
 0x1f5   : > { %v1153_v44 = vadd.f32 %v3864_v28, %v1152_v43  ;;  %v3125_v45 = vpop.f32.mrb[22].mxu1  ;;  %3198 = vmatprep.mubr.bf16.mxu0 %v1399_v40 }
 0x1f6   : > { %v1164_v46 = vadd.f32 %v3125_v45, %v3864_v28  ;;  %v1155_v47 = vpop.f32.mrb[23].mxu1  ;;  %3199 = vmatmul.mubr.bf16.gmra.mrb[80].mxu0 %v1400_v39  ;;  %v1349_v50 = vmax.f32 %v1161_v42, 0.0 }
 0x1f7   : > { %v1156_v48 = vadd.f32 %v3864_v28, %v1155_v47  ;;  %v1347_v52 = vmax.f32 %v1153_v44, 0.0 }
 0x1f8   : > { %v1350_v51 = vmax.f32 %v1164_v46, 0.0 }
 0x1f9   : > { %v1348_v53 = vmax.f32 %v1156_v48, 0.0 }
 0x1fa   : > { %v1402_v54 = vpack.c.bf16 %v1350_v51, %v1349_v50 }
 0x1fb   : > { %v1401_v55 = vpack.c.bf16 %v1348_v53, %v1347_v52  ;;  %v3128_v56 = vpop.f32.mrb[24].mxu1 }
 0x1fc   : > { %v1177_v57 = vadd.f32 %v3128_v56, %v3864_v28  ;;  %v1168_v58 = vpop.f32.mrb[25].mxu1 }
 0x1fd   : > { %v1169_v59 = vadd.f32 %v3864_v28, %v1168_v58  ;;  %v3129_v60 = vpop.f32.mrb[26].mxu1  ;;  %3202 = vmatprep.mubr.bf16.mxu0 %v1401_v55 }
 0x1fe   : > { %v1180_v61 = vadd.f32 %v3129_v60, %v3864_v28  ;;  %v1171_v62 = vpop.f32.mrb[27].mxu1  ;;  %3203 = vmatmul.mubr.bf16.gmra.mrb[84].mxu0 %v1402_v54  ;;  %v1353_v0 = vmax.f32 %v1177_v57, 0.0 }
 0x1ff   : > { %v1172_v63 = vadd.f32 %v3864_v28, %v1171_v62  ;;  %v1351_v2 = vmax.f32 %v1169_v59, 0.0 }
 0x200   : > { %v1354_v1 = vmax.f32 %v1180_v61, 0.0 }
 0x201   : > { %v1352_v3 = vmax.f32 %v1172_v63, 0.0 }
 0x202   : > { %v1404_v4 = vpack.c.bf16 %v1354_v1, %v1353_v0 }
 0x203   : > { %v1403_v5 = vpack.c.bf16 %v1352_v3, %v1351_v2  ;;  %v3132_v6 = vpop.f32.mrb[28].mxu1 }
 0x204   : > { %v1193_v7 = vadd.f32 %v3132_v6, %v3864_v28  ;;  %v1184_v8 = vpop.f32.mrb[29].mxu1 }
 0x205   : > { %v1185_v9 = vadd.f32 %v3864_v28, %v1184_v8  ;;  %v3133_v10 = vpop.f32.mrb[30].mxu1  ;;  %3206 = vmatprep.mubr.bf16.mxu0 %v1403_v5 }
 0x206   : > { %v1196_v11 = vadd.f32 %v3133_v10, %v3864_v28  ;;  %v1187_v12 = vpop.f32.mrb[31].mxu1  ;;  %3207 = vmatmul.mubr.bf16.gmra.mrb[88].mxu0 %v1404_v4  ;;  %v1357_v14 = vmax.f32 %v1193_v7, 0.0 }
 0x207   : > { %v1188_v13 = vadd.f32 %v3864_v28, %v1187_v12  ;;  %v1355_v16 = vmax.f32 %v1185_v9, 0.0 }
 0x208   : > { %v1358_v15 = vmax.f32 %v1196_v11, 0.0 }
 0x209   : > { %v1356_v17 = vmax.f32 %v1188_v13, 0.0 }
 0x20a   : > { %v1406_v18 = vpack.c.bf16 %v1358_v15, %v1357_v14 }
 0x20b   : > { %v1405_v19 = vpack.c.bf16 %v1356_v17, %v1355_v16  ;;  %v3136_v20 = vpop.f32.mrb[32].mxu1 }
 0x20c   : > { %v1209_v21 = vadd.f32 %v3136_v20, %v3864_v28  ;;  %v1200_v22 = vpop.f32.mrb[33].mxu1  ;;  %v3457_v20 = vld [vmem:[%s4433_s7 + $0x38] sm:$0xff]  }
 0x20d   : > { %v1201_v23 = vadd.f32 %v3864_v28, %v1200_v22  ;;  %v3137_v24 = vpop.f32.mrb[34].mxu1  ;;  %3210 = vmatprep.mubr.bf16.mxu0 %v1405_v19  ;;  %3333 = vmatprep.subr.bf16.mxu1 %v3457_v20 }
 0x20e   : > { %v1212_v25 = vadd.f32 %v3137_v24, %v3864_v28  ;;  %v1203_v26 = vpop.f32.mrb[35].mxu1  ;;  %3211 = vmatmul.mubr.bf16.gmra.mrb[92].mxu0 %v1406_v18  ;;  %v1361_v49 = vmax.f32 %v1209_v21, 0.0  ;;  %3260 = vmatprep.subr.bf16.mxu0 %v3457_v20 }
 0x20f   : > { %v1204_v27 = vadd.f32 %v3864_v28, %v1203_v26  ;;  %v1359_v30 = vmax.f32 %v1201_v23, 0.0  ;;  %3341 = vmatpush3.bf16.msra.mxu1 %v3457_v20  ;;  %3261 = vmatpush3.bf16.msra.mxu0 %v3457_v20 }
 0x210   : > { %v1362_v29 = vmax.f32 %v1212_v25, 0.0 }
 0x211   : > { %v1360_v31 = vmax.f32 %v1204_v27, 0.0 }
 0x212   : > { %v1408_v32 = vpack.c.bf16 %v1362_v29, %v1361_v49 }
 0x213   : > { %v1407_v33 = vpack.c.bf16 %v1360_v31, %v1359_v30  ;;  %v3140_v34 = vpop.f32.mrb[36].mxu1 }
 0x214   : > { %v1225_v35 = vadd.f32 %v3140_v34, %v3864_v28  ;;  %v1216_v36 = vpop.f32.mrb[37].mxu1 }
 0x215   : > { %v1217_v37 = vadd.f32 %v3864_v28, %v1216_v36  ;;  %v3141_v38 = vpop.f32.mrb[38].mxu1  ;;  %3214 = vmatprep.mubr.bf16.mxu0 %v1407_v33 }
 0x216   : > { %v1228_v39 = vadd.f32 %v3141_v38, %v3864_v28  ;;  %v1219_v40 = vpop.f32.mrb[39].mxu1  ;;  %3215 = vmatmul.mubr.bf16.gmra.mrb[96].mxu0 %v1408_v32  ;;  %v1365_v42 = vmax.f32 %v1225_v35, 0.0 }
 0x217   : > { %v1220_v41 = vadd.f32 %v3864_v28, %v1219_v40  ;;  %v1363_v44 = vmax.f32 %v1217_v37, 0.0 }
 0x218   : > { %v1366_v43 = vmax.f32 %v1228_v39, 0.0 }
 0x219   : > { %v1364_v45 = vmax.f32 %v1220_v41, 0.0 }
 0x21a   : > { %v1410_v46 = vpack.c.bf16 %v1366_v43, %v1365_v42 }
 0x21b   : > { %v1409_v47 = vpack.c.bf16 %v1364_v45, %v1363_v44  ;;  %v3144_v48 = vpop.f32.mrb[40].mxu1 }
 0x21c   : > { %v1241_v50 = vadd.f32 %v3144_v48, %v3864_v28  ;;  %v1232_v51 = vpop.f32.mrb[41].mxu1 }
 0x21d   : > { %v1233_v52 = vadd.f32 %v3864_v28, %v1232_v51  ;;  %v3145_v53 = vpop.f32.mrb[42].mxu1  ;;  %3218 = vmatprep.mubr.bf16.mxu0 %v1409_v47 }
 0x21e   : > { %v1244_v54 = vadd.f32 %v3145_v53, %v3864_v28  ;;  %v1235_v55 = vpop.f32.mrb[43].mxu1  ;;  %3219 = vmatmul.mubr.bf16.gmra.mrb[100].mxu0 %v1410_v46  ;;  %v1369_v57 = vmax.f32 %v1241_v50, 0.0 }
 0x21f   : > { %v1236_v56 = vadd.f32 %v3864_v28, %v1235_v55  ;;  %v1367_v59 = vmax.f32 %v1233_v52, 0.0 }
 0x220   : > { %v1370_v58 = vmax.f32 %v1244_v54, 0.0 }
 0x221   : > { %v1368_v60 = vmax.f32 %v1236_v56, 0.0 }
 0x222   : > { %v1412_v61 = vpack.c.bf16 %v1370_v58, %v1369_v57 }
 0x223   : > { %v1411_v62 = vpack.c.bf16 %v1368_v60, %v1367_v59  ;;  %v3148_v63 = vpop.f32.mrb[44].mxu1 }
 0x224   : > { %v1257_v0 = vadd.f32 %v3148_v63, %v3864_v28  ;;  %v1248_v1 = vpop.f32.mrb[45].mxu1 }
 0x225   : > { %v1249_v2 = vadd.f32 %v3864_v28, %v1248_v1  ;;  %v3149_v3 = vpop.f32.mrb[46].mxu1  ;;  %3222 = vmatprep.mubr.bf16.mxu0 %v1411_v62 }
 0x226   : > { %v1260_v4 = vadd.f32 %v3149_v3, %v3864_v28  ;;  %v1251_v5 = vpop.f32.mrb[47].mxu1  ;;  %3223 = vmatmul.mubr.bf16.gmra.mrb[104].mxu0 %v1412_v61  ;;  %v1373_v7 = vmax.f32 %v1257_v0, 0.0 }
 0x227   : > { %v1252_v6 = vadd.f32 %v3864_v28, %v1251_v5  ;;  %v1371_v9 = vmax.f32 %v1249_v2, 0.0 }
 0x228   : > { %v1374_v8 = vmax.f32 %v1260_v4, 0.0 }
 0x229   : > { %v1372_v10 = vmax.f32 %v1252_v6, 0.0 }
 0x22a   : > { %v1414_v11 = vpack.c.bf16 %v1374_v8, %v1373_v7  ;;  %v3954_v7 = vld [vmem:[%s4432_s6] ss:$0 sm:$0xff] }
 0x22b   : > { %v1413_v12 = vpack.c.bf16 %v1372_v10, %v1371_v9  ;;  %v3152_v13 = vpop.f32.mrb[48].mxu1 }
 0x22c   : > { %v1273_v14 = vadd.f32 %v3152_v13, %v3864_v28  ;;  %v1264_v15 = vpop.f32.mrb[49].mxu1 }
 0x22d   : > { %v1265_v16 = vadd.f32 %v3864_v28, %v1264_v15  ;;  %v3153_v17 = vpop.f32.mrb[50].mxu1  ;;  %3226 = vmatprep.mubr.bf16.mxu0 %v1413_v12 }
 0x22e   : > { %v1276_v18 = vadd.f32 %v3153_v17, %v3864_v28  ;;  %v1267_v19 = vpop.f32.mrb[51].mxu1  ;;  %3227 = vmatmul.mubr.bf16.gmra.mrb[108].mxu0 %v1414_v11  ;;  %v1377_v22 = vmax.f32 %v1273_v14, 0.0 }
 0x22f   : > { %v1268_v21 = vadd.f32 %v3864_v28, %v1267_v19  ;;  %v1375_v24 = vmax.f32 %v1265_v16, 0.0 }
 0x230   : > { %v1378_v23 = vmax.f32 %v1276_v18, 0.0 }
 0x231   : > { %v1376_v25 = vmax.f32 %v1268_v21, 0.0 }
 0x232   : > { %v1416_v26 = vpack.c.bf16 %v1378_v23, %v1377_v22 }
 0x233   : > { %v1415_v27 = vpack.c.bf16 %v1376_v25, %v1375_v24  ;;  %v3156_v49 = vpop.f32.mrb[52].mxu1 }
 0x234   : > { %v1289_v29 = vadd.f32 %v3156_v49, %v3864_v28  ;;  %v1280_v30 = vpop.f32.mrb[53].mxu1 }
 0x235   : > { %v1281_v31 = vadd.f32 %v3864_v28, %v1280_v30  ;;  %v3157_v32 = vpop.f32.mrb[54].mxu1  ;;  %3230 = vmatprep.mubr.bf16.mxu0 %v1415_v27 }
 0x236   : > { %v1292_v33 = vadd.f32 %v3157_v32, %v3864_v28  ;;  %v1283_v34 = vpop.f32.mrb[55].mxu1  ;;  %3231 = vmatmul.mubr.bf16.gmra.mrb[112].mxu0 %v1416_v26  ;;  %v1381_v36 = vmax.f32 %v1289_v29, 0.0 }
 0x237   : > { %v1284_v35 = vadd.f32 %v3864_v28, %v1283_v34  ;;  %v1379_v38 = vmax.f32 %v1281_v31, 0.0 }
 0x238   : > { %v1382_v37 = vmax.f32 %v1292_v33, 0.0 }
 0x239   : > { %v1380_v39 = vmax.f32 %v1284_v35, 0.0 }
 0x23a   : > { %v1418_v40 = vpack.c.bf16 %v1382_v37, %v1381_v36 }
 0x23b   : > { %v1417_v41 = vpack.c.bf16 %v1380_v39, %v1379_v38  ;;  %v3160_v42 = vpop.f32.mrb[56].mxu1 }
 0x23c   : > { %v1305_v43 = vadd.f32 %v3160_v42, %v3864_v28  ;;  %v1296_v44 = vpop.f32.mrb[57].mxu1 }
 0x23d   : > { %v1297_v45 = vadd.f32 %v3864_v28, %v1296_v44  ;;  %v3161_v46 = vpop.f32.mrb[58].mxu1  ;;  %3234 = vmatprep.mubr.bf16.mxu0 %v1417_v41 }
 0x23e   : > { %v1308_v47 = vadd.f32 %v3161_v46, %v3864_v28  ;;  %v1299_v48 = vpop.f32.mrb[59].mxu1  ;;  %3235 = vmatmul.mubr.bf16.gmra.mrb[116].mxu0 %v1418_v40  ;;  %v1385_v51 = vmax.f32 %v1305_v43, 0.0 }
 0x23f   : > { %v1300_v50 = vadd.f32 %v3864_v28, %v1299_v48  ;;  %v1383_v53 = vmax.f32 %v1297_v45, 0.0 }
 0x240   : > { %v1386_v52 = vmax.f32 %v1308_v47, 0.0 }
 0x241   : > { %v1384_v54 = vmax.f32 %v1300_v50, 0.0 }
 0x242   : > { %v1420_v55 = vpack.c.bf16 %v1386_v52, %v1385_v51 }
 0x243   : > { %v1419_v56 = vpack.c.bf16 %v1384_v54, %v1383_v53  ;;  %v3164_v57 = vpop.f32.mrb[60].mxu1 }
 0x244   : > { %v1321_v58 = vadd.f32 %v3164_v57, %v3864_v28  ;;  %v1312_v59 = vpop.f32.mrb[61].mxu1 }
 0x245   : > { %v1313_v60 = vadd.f32 %v3864_v28, %v1312_v59  ;;  %v3165_v61 = vpop.f32.mrb[62].mxu1  ;;  %3238 = vmatprep.mubr.bf16.mxu0 %v1419_v56 }
 0x246   : > { %v1324_v62 = vadd.f32 %v3165_v61, %v3864_v28  ;;  %v1315_v63 = vpop.f32.mrb[63].mxu1  ;;  %3239 = vmatmul.mubr.bf16.gmra.mrb[120].mxu0 %v1420_v55  ;;  %v1389_v1 = vmax.f32 %v1321_v58, 0.0 }
 0x247   : > { %v1316_v0 = vadd.f32 %v3864_v28, %v1315_v63  ;;  %v1387_v3 = vmax.f32 %v1313_v60, 0.0 }
 0x248   : > { %v1390_v2 = vmax.f32 %v1324_v62, 0.0 }
 0x249   : > { %v1388_v4 = vmax.f32 %v1316_v0, 0.0 }
 0x24a   : > { %v1422_v5 = vpack.c.bf16 %v1390_v2, %v1389_v1 }
 0x24b   : > { %v1421_v6 = vpack.c.bf16 %v1388_v4, %v1387_v3 }
 0x24d   : > { %3242 = vmatprep.mubr.bf16.mxu0 %v1421_v6 }
 0x24e   : > { %3243 = vmatmul.mubr.bf16.gmra.mrb[124].mxu0 %v1422_v5 }
 0x2a9   : > { %v3184_v8 = vpop.f32.mrb[64].mxu0 }
 0x2aa   : > { %v1537_v9 = vadd.f32 %v3184_v8, %v3954_v7  ;;  %v1528_v10 = vpop.f32.mrb[65].mxu0 }
 0x2ab   : > { %v1529_v11 = vadd.f32 %v3954_v7, %v1528_v10  ;;  %v3185_v28 = vpop.f32.mrb[66].mxu0 }
 0x2ac   : > { %v1540_v12 = vadd.f32 %v3185_v28, %v3954_v7  ;;  %v1531_v13 = vpop.f32.mrb[67].mxu0  ;;  %v1785_v15 = vmax.f32 %v1537_v9, 0.0 }
 0x2ad   : > { %v1532_v14 = vadd.f32 %v3954_v7, %v1531_v13  ;;  %v1783_v17 = vmax.f32 %v1529_v11, 0.0 }
 0x2ae   : > { %v1786_v16 = vmax.f32 %v1540_v12, 0.0 }
 0x2af   : > { %v1784_v18 = vmax.f32 %v1532_v14, 0.0 }
 0x2b0   : > { %v1848_v19 = vpack.c.bf16 %v1786_v16, %v1785_v15 }
 0x2b1   : > { %v1847_v20 = vpack.c.bf16 %v1784_v18, %v1783_v17  ;;  %v3188_v21 = vpop.f32.mrb[68].mxu0 }
 0x2b2   : > { %v1553_v22 = vadd.f32 %v3188_v21, %v3954_v7  ;;  %v1544_v23 = vpop.f32.mrb[69].mxu0 }
 0x2b3   : > { %v1545_v24 = vadd.f32 %v3954_v7, %v1544_v23  ;;  %v3189_v25 = vpop.f32.mrb[70].mxu0  ;;  %3262 = vmatprep.mubr.bf16.mxu0 %v1847_v20 }
 0x2b4   : > { %v1556_v26 = vadd.f32 %v3189_v25, %v3954_v7  ;;  %v1547_v27 = vpop.f32.mrb[71].mxu0  ;;  %3263 = vmatmul.mubr.bf16.vlgmr.msra.gmra.mrb[128].mxu0 %v1848_v19  ;;  %v1789_v29 = vmax.f32 %v1553_v22, 0.0 }
 0x2b5   : > { %v1548_v49 = vadd.f32 %v3954_v7, %v1547_v27  ;;  %v1787_v31 = vmax.f32 %v1545_v24, 0.0 }
 0x2b6   : > { %v1790_v30 = vmax.f32 %v1556_v26, 0.0 }
 0x2b7   : > { %v1788_v32 = vmax.f32 %v1548_v49, 0.0 }
 0x2b8   : > { %v1850_v33 = vpack.c.bf16 %v1790_v30, %v1789_v29 }
 0x2b9   : > { %v1849_v34 = vpack.c.bf16 %v1788_v32, %v1787_v31  ;;  %v3192_v35 = vpop.f32.mrb[72].mxu0 }
 0x2ba   : > { %v1569_v36 = vadd.f32 %v3192_v35, %v3954_v7  ;;  %v1560_v37 = vpop.f32.mrb[73].mxu0 }
 0x2bb   : > { %v1561_v38 = vadd.f32 %v3954_v7, %v1560_v37  ;;  %v3193_v39 = vpop.f32.mrb[74].mxu0  ;;  %3266 = vmatprep.mubr.bf16.mxu1 %v1849_v34 }
 0x2bc   : > { %v1572_v40 = vadd.f32 %v3193_v39, %v3954_v7  ;;  %v1563_v41 = vpop.f32.mrb[75].mxu0  ;;  %3267 = vmatmul.mubr.bf16.vlgmr.msra.gmra.mrb[64].mxu1 %v1850_v33  ;;  %v1793_v43 = vmax.f32 %v1569_v36, 0.0 }
 0x2bd   : > { %v1564_v42 = vadd.f32 %v3954_v7, %v1563_v41  ;;  %v1791_v45 = vmax.f32 %v1561_v38, 0.0 }
 0x2be   : > { %v1794_v44 = vmax.f32 %v1572_v40, 0.0 }
 0x2bf   : > { %v1792_v46 = vmax.f32 %v1564_v42, 0.0 }
 0x2c0   : > { %v1852_v47 = vpack.c.bf16 %v1794_v44, %v1793_v43 }
 0x2c1   : > { %v1851_v48 = vpack.c.bf16 %v1792_v46, %v1791_v45  ;;  %v3196_v50 = vpop.f32.mrb[76].mxu0 }
 0x2c2   : > { %v1585_v51 = vadd.f32 %v3196_v50, %v3954_v7  ;;  %v1576_v52 = vpop.f32.mrb[77].mxu0 }
 0x2c3   : > { %v1577_v53 = vadd.f32 %v3954_v7, %v1576_v52  ;;  %v3197_v54 = vpop.f32.mrb[78].mxu0  ;;  %3270 = vmatprep.mubr.bf16.mxu1 %v1851_v48 }
 0x2c4   : > { %v1588_v55 = vadd.f32 %v3197_v54, %v3954_v7  ;;  %v1579_v56 = vpop.f32.mrb[79].mxu0  ;;  %3271 = vmatmul.mubr.bf16.gmra.mrb[68].mxu1 %v1852_v47  ;;  %v1797_v58 = vmax.f32 %v1585_v51, 0.0 }
 0x2c5   : > { %v1580_v57 = vadd.f32 %v3954_v7, %v1579_v56  ;;  %v1795_v60 = vmax.f32 %v1577_v53, 0.0 }
 0x2c6   : > { %v1798_v59 = vmax.f32 %v1588_v55, 0.0 }
 0x2c7   : > { %v1796_v61 = vmax.f32 %v1580_v57, 0.0 }
 0x2c8   : > { %v1854_v62 = vpack.c.bf16 %v1798_v59, %v1797_v58 }
 0x2c9   : > { %v1853_v63 = vpack.c.bf16 %v1796_v61, %v1795_v60  ;;  %v3200_v0 = vpop.f32.mrb[80].mxu0 }
 0x2ca   : > { %v1601_v1 = vadd.f32 %v3200_v0, %v3954_v7  ;;  %v1592_v2 = vpop.f32.mrb[81].mxu0 }
 0x2cb   : > { %v1593_v3 = vadd.f32 %v3954_v7, %v1592_v2  ;;  %v3201_v4 = vpop.f32.mrb[82].mxu0  ;;  %3274 = vmatprep.mubr.bf16.mxu1 %v1853_v63 }
 0x2cc   : > { %v1604_v5 = vadd.f32 %v3201_v4, %v3954_v7  ;;  %v1595_v6 = vpop.f32.mrb[83].mxu0  ;;  %3275 = vmatmul.mubr.bf16.gmra.mrb[72].mxu1 %v1854_v62  ;;  %v1801_v9 = vmax.f32 %v1601_v1, 0.0 }
 0x2cd   : > { %v1596_v8 = vadd.f32 %v3954_v7, %v1595_v6  ;;  %v1799_v11 = vmax.f32 %v1593_v3, 0.0 }
 0x2ce   : > { %v1802_v10 = vmax.f32 %v1604_v5, 0.0 }
 0x2cf   : > { %v1800_v28 = vmax.f32 %v1596_v8, 0.0 }
 0x2d0   : > { %v1856_v12 = vpack.c.bf16 %v1802_v10, %v1801_v9 }
 0x2d1   : > { %v1855_v13 = vpack.c.bf16 %v1800_v28, %v1799_v11  ;;  %v3204_v14 = vpop.f32.mrb[84].mxu0 }
 0x2d2   : > { %v1617_v15 = vadd.f32 %v3204_v14, %v3954_v7  ;;  %v1608_v16 = vpop.f32.mrb[85].mxu0 }
 0x2d3   : > { %v1609_v17 = vadd.f32 %v3954_v7, %v1608_v16  ;;  %v3205_v18 = vpop.f32.mrb[86].mxu0  ;;  %3278 = vmatprep.mubr.bf16.mxu1 %v1855_v13 }
 0x2d4   : > { %v1620_v19 = vadd.f32 %v3205_v18, %v3954_v7  ;;  %v1611_v20 = vpop.f32.mrb[87].mxu0  ;;  %3279 = vmatmul.mubr.bf16.gmra.mrb[76].mxu1 %v1856_v12  ;;  %v1805_v22 = vmax.f32 %v1617_v15, 0.0 }
 0x2d5   : > { %v1612_v21 = vadd.f32 %v3954_v7, %v1611_v20  ;;  %v1803_v24 = vmax.f32 %v1609_v17, 0.0 }
 0x2d6   : > { %v1806_v23 = vmax.f32 %v1620_v19, 0.0 }
 0x2d7   : > { %v1804_v25 = vmax.f32 %v1612_v21, 0.0 }
 0x2d8   : > { %v1858_v26 = vpack.c.bf16 %v1806_v23, %v1805_v22 }
 0x2d9   : > { %v1857_v27 = vpack.c.bf16 %v1804_v25, %v1803_v24  ;;  %v3208_v49 = vpop.f32.mrb[88].mxu0 }
 0x2da   : > { %v1633_v29 = vadd.f32 %v3208_v49, %v3954_v7  ;;  %v1624_v30 = vpop.f32.mrb[89].mxu0 }
 0x2db   : > { %v1625_v31 = vadd.f32 %v3954_v7, %v1624_v30  ;;  %v3209_v32 = vpop.f32.mrb[90].mxu0  ;;  %3282 = vmatprep.mubr.bf16.mxu1 %v1857_v27 }
 0x2dc   : > { %v1636_v33 = vadd.f32 %v3209_v32, %v3954_v7  ;;  %v1627_v34 = vpop.f32.mrb[91].mxu0  ;;  %3283 = vmatmul.mubr.bf16.gmra.mrb[80].mxu1 %v1858_v26  ;;  %v1809_v36 = vmax.f32 %v1633_v29, 0.0 }
 0x2dd   : > { %v1628_v35 = vadd.f32 %v3954_v7, %v1627_v34  ;;  %v1807_v38 = vmax.f32 %v1625_v31, 0.0 }
 0x2de   : > { %v1810_v37 = vmax.f32 %v1636_v33, 0.0 }
 0x2df   : > { %v1808_v39 = vmax.f32 %v1628_v35, 0.0 }
 0x2e0   : > { %v1860_v40 = vpack.c.bf16 %v1810_v37, %v1809_v36 }
 0x2e1   : > { %v1859_v41 = vpack.c.bf16 %v1808_v39, %v1807_v38  ;;  %v3212_v42 = vpop.f32.mrb[92].mxu0 }
 0x2e2   : > { %v1649_v43 = vadd.f32 %v3212_v42, %v3954_v7  ;;  %v1640_v44 = vpop.f32.mrb[93].mxu0 }
 0x2e3   : > { %v1641_v45 = vadd.f32 %v3954_v7, %v1640_v44  ;;  %v3213_v46 = vpop.f32.mrb[94].mxu0  ;;  %3286 = vmatprep.mubr.bf16.mxu1 %v1859_v41 }
 0x2e4   : > { %v1652_v47 = vadd.f32 %v3213_v46, %v3954_v7  ;;  %v1643_v48 = vpop.f32.mrb[95].mxu0  ;;  %3287 = vmatmul.mubr.bf16.gmra.mrb[84].mxu1 %v1860_v40  ;;  %v1813_v51 = vmax.f32 %v1649_v43, 0.0 }
 0x2e5   : > { %v1644_v50 = vadd.f32 %v3954_v7, %v1643_v48  ;;  %v1811_v53 = vmax.f32 %v1641_v45, 0.0 }
 0x2e6   : > { %v1814_v52 = vmax.f32 %v1652_v47, 0.0 }
 0x2e7   : > { %v1812_v54 = vmax.f32 %v1644_v50, 0.0 }
 0x2e8   : > { %v1862_v55 = vpack.c.bf16 %v1814_v52, %v1813_v51 }
 0x2e9   : > { %v1861_v56 = vpack.c.bf16 %v1812_v54, %v1811_v53  ;;  %v3216_v57 = vpop.f32.mrb[96].mxu0 }
 0x2ea   : > { %v1665_v58 = vadd.f32 %v3216_v57, %v3954_v7  ;;  %v1656_v59 = vpop.f32.mrb[97].mxu0 }
 0x2eb   : > { %v1657_v60 = vadd.f32 %v3954_v7, %v1656_v59  ;;  %v3217_v61 = vpop.f32.mrb[98].mxu0  ;;  %3290 = vmatprep.mubr.bf16.mxu1 %v1861_v56 }
 0x2ec   : > { %v1668_v62 = vadd.f32 %v3217_v61, %v3954_v7  ;;  %v1659_v63 = vpop.f32.mrb[99].mxu0  ;;  %3291 = vmatmul.mubr.bf16.gmra.mrb[88].mxu1 %v1862_v55  ;;  %v1817_v1 = vmax.f32 %v1665_v58, 0.0 }
 0x2ed   : > { %v1660_v0 = vadd.f32 %v3954_v7, %v1659_v63  ;;  %v1815_v3 = vmax.f32 %v1657_v60, 0.0 }
 0x2ee   : > { %v1818_v2 = vmax.f32 %v1668_v62, 0.0 }
 0x2ef   : > { %v1816_v4 = vmax.f32 %v1660_v0, 0.0 }
 0x2f0   : > { %v1864_v5 = vpack.c.bf16 %v1818_v2, %v1817_v1 }
 0x2f1   : > { %v1863_v6 = vpack.c.bf16 %v1816_v4, %v1815_v3  ;;  %v3220_v8 = vpop.f32.mrb[100].mxu0 }
 0x2f2   : > { %v1681_v9 = vadd.f32 %v3220_v8, %v3954_v7  ;;  %v1672_v10 = vpop.f32.mrb[101].mxu0 }
 0x2f3   : > { %v1673_v11 = vadd.f32 %v3954_v7, %v1672_v10  ;;  %v3221_v28 = vpop.f32.mrb[102].mxu0  ;;  %3294 = vmatprep.mubr.bf16.mxu1 %v1863_v6 }
 0x2f4   : > { %v1684_v12 = vadd.f32 %v3221_v28, %v3954_v7  ;;  %v1675_v13 = vpop.f32.mrb[103].mxu0  ;;  %3295 = vmatmul.mubr.bf16.gmra.mrb[92].mxu1 %v1864_v5  ;;  %v1821_v15 = vmax.f32 %v1681_v9, 0.0 }
 0x2f5   : > { %v1676_v14 = vadd.f32 %v3954_v7, %v1675_v13  ;;  %v1819_v17 = vmax.f32 %v1673_v11, 0.0 }
 0x2f6   : > { %v1822_v16 = vmax.f32 %v1684_v12, 0.0 }
 0x2f7   : > { %v1820_v18 = vmax.f32 %v1676_v14, 0.0 }
 0x2f8   : > { %v1866_v19 = vpack.c.bf16 %v1822_v16, %v1821_v15 }
 0x2f9   : > { %v1865_v20 = vpack.c.bf16 %v1820_v18, %v1819_v17  ;;  %v3224_v21 = vpop.f32.mrb[104].mxu0 }
 0x2fa   : > { %v1697_v22 = vadd.f32 %v3224_v21, %v3954_v7  ;;  %v1688_v23 = vpop.f32.mrb[105].mxu0 }
 0x2fb   : > { %v1689_v24 = vadd.f32 %v3954_v7, %v1688_v23  ;;  %v3225_v25 = vpop.f32.mrb[106].mxu0  ;;  %3298 = vmatprep.mubr.bf16.mxu1 %v1865_v20 }
 0x2fc   : > { %v1700_v26 = vadd.f32 %v3225_v25, %v3954_v7  ;;  %v1691_v27 = vpop.f32.mrb[107].mxu0  ;;  %3299 = vmatmul.mubr.bf16.gmra.mrb[96].mxu1 %v1866_v19  ;;  %v1825_v29 = vmax.f32 %v1697_v22, 0.0 }
 0x2fd   : > { %v1692_v49 = vadd.f32 %v3954_v7, %v1691_v27  ;;  %v1823_v31 = vmax.f32 %v1689_v24, 0.0 }
 0x2fe   : > { %v1826_v30 = vmax.f32 %v1700_v26, 0.0 }
 0x2ff   : > { %v1824_v32 = vmax.f32 %v1692_v49, 0.0 }
 0x300   : > { %v1868_v33 = vpack.c.bf16 %v1826_v30, %v1825_v29 }
 0x301   : > { %v1867_v34 = vpack.c.bf16 %v1824_v32, %v1823_v31  ;;  %v3228_v35 = vpop.f32.mrb[108].mxu0 }
 0x302   : > { %v1713_v36 = vadd.f32 %v3228_v35, %v3954_v7  ;;  %v1704_v37 = vpop.f32.mrb[109].mxu0 }
 0x303   : > { %v1705_v38 = vadd.f32 %v3954_v7, %v1704_v37  ;;  %v3229_v39 = vpop.f32.mrb[110].mxu0  ;;  %3302 = vmatprep.mubr.bf16.mxu1 %v1867_v34 }
 0x304   : > { %v1716_v40 = vadd.f32 %v3229_v39, %v3954_v7  ;;  %v1707_v41 = vpop.f32.mrb[111].mxu0  ;;  %3303 = vmatmul.mubr.bf16.gmra.mrb[100].mxu1 %v1868_v33  ;;  %v1829_v43 = vmax.f32 %v1713_v36, 0.0 }
 0x305   : > { %v1708_v42 = vadd.f32 %v3954_v7, %v1707_v41  ;;  %v1827_v45 = vmax.f32 %v1705_v38, 0.0 }
 0x306   : > { %v1830_v44 = vmax.f32 %v1716_v40, 0.0 }
 0x307   : > { %v1828_v46 = vmax.f32 %v1708_v42, 0.0  ;;  %v4024_v42 = vld [vmem:[%s4434_s8] ss:$0 sm:$0xff] }
 0x308   : > { %v1870_v47 = vpack.c.bf16 %v1830_v44, %v1829_v43 }
 0x309   : > { %v1869_v48 = vpack.c.bf16 %v1828_v46, %v1827_v45  ;;  %v3232_v50 = vpop.f32.mrb[112].mxu0 }
 0x30a   : > { %v1729_v51 = vadd.f32 %v3232_v50, %v3954_v7  ;;  %v1720_v52 = vpop.f32.mrb[113].mxu0 }
 0x30b   : > { %v1721_v53 = vadd.f32 %v3954_v7, %v1720_v52  ;;  %v3233_v54 = vpop.f32.mrb[114].mxu0  ;;  %3306 = vmatprep.mubr.bf16.mxu1 %v1869_v48 }
 0x30c   : > { %v1732_v55 = vadd.f32 %v3233_v54, %v3954_v7  ;;  %v1723_v56 = vpop.f32.mrb[115].mxu0  ;;  %3307 = vmatmul.mubr.bf16.gmra.mrb[104].mxu1 %v1870_v47  ;;  %v1833_v58 = vmax.f32 %v1729_v51, 0.0 }
 0x30d   : > { %v1724_v57 = vadd.f32 %v3954_v7, %v1723_v56  ;;  %v1831_v60 = vmax.f32 %v1721_v53, 0.0 }
 0x30e   : > { %v1834_v59 = vmax.f32 %v1732_v55, 0.0 }
 0x30f   : > { %v1832_v61 = vmax.f32 %v1724_v57, 0.0 }
 0x310   : > { %v1872_v62 = vpack.c.bf16 %v1834_v59, %v1833_v58 }
 0x311   : > { %v1871_v63 = vpack.c.bf16 %v1832_v61, %v1831_v60  ;;  %v3236_v0 = vpop.f32.mrb[116].mxu0 }
 0x312   : > { %v1745_v1 = vadd.f32 %v3236_v0, %v3954_v7  ;;  %v1736_v2 = vpop.f32.mrb[117].mxu0 }
 0x313   : > { %v1737_v3 = vadd.f32 %v3954_v7, %v1736_v2  ;;  %v3237_v4 = vpop.f32.mrb[118].mxu0  ;;  %3310 = vmatprep.mubr.bf16.mxu1 %v1871_v63 }
 0x314   : > { %v1748_v5 = vadd.f32 %v3237_v4, %v3954_v7  ;;  %v1739_v6 = vpop.f32.mrb[119].mxu0  ;;  %3311 = vmatmul.mubr.bf16.gmra.mrb[108].mxu1 %v1872_v62  ;;  %v1837_v9 = vmax.f32 %v1745_v1, 0.0 }
 0x315   : > { %v1740_v8 = vadd.f32 %v3954_v7, %v1739_v6  ;;  %v1835_v11 = vmax.f32 %v1737_v3, 0.0 }
 0x316   : > { %v1838_v10 = vmax.f32 %v1748_v5, 0.0 }
 0x317   : > { %v1836_v28 = vmax.f32 %v1740_v8, 0.0 }
 0x318   : > { %v1874_v12 = vpack.c.bf16 %v1838_v10, %v1837_v9 }
 0x319   : > { %v1873_v13 = vpack.c.bf16 %v1836_v28, %v1835_v11  ;;  %v3240_v14 = vpop.f32.mrb[120].mxu0 }
 0x31a   : > { %v1761_v15 = vadd.f32 %v3240_v14, %v3954_v7  ;;  %v1752_v16 = vpop.f32.mrb[121].mxu0 }
 0x31b   : > { %v1753_v17 = vadd.f32 %v3954_v7, %v1752_v16  ;;  %v3241_v18 = vpop.f32.mrb[122].mxu0  ;;  %3314 = vmatprep.mubr.bf16.mxu1 %v1873_v13 }
 0x31c   : > { %v1764_v19 = vadd.f32 %v3241_v18, %v3954_v7  ;;  %v1755_v20 = vpop.f32.mrb[123].mxu0  ;;  %3315 = vmatmul.mubr.bf16.gmra.mrb[112].mxu1 %v1874_v12  ;;  %v1841_v22 = vmax.f32 %v1761_v15, 0.0 }
 0x31d   : > { %v1756_v21 = vadd.f32 %v3954_v7, %v1755_v20  ;;  %v1839_v24 = vmax.f32 %v1753_v17, 0.0 }
 0x31e   : > { %v1842_v23 = vmax.f32 %v1764_v19, 0.0 }
 0x31f   : > { %v1840_v25 = vmax.f32 %v1756_v21, 0.0 }
 0x320   : > { %v1876_v26 = vpack.c.bf16 %v1842_v23, %v1841_v22 }
 0x321   : > { %v1875_v27 = vpack.c.bf16 %v1840_v25, %v1839_v24  ;;  %v3244_v49 = vpop.f32.mrb[124].mxu0 }
 0x322   : > { %v1777_v29 = vadd.f32 %v3244_v49, %v3954_v7  ;;  %v1768_v30 = vpop.f32.mrb[125].mxu0 }
 0x323   : > { %v1769_v31 = vadd.f32 %v3954_v7, %v1768_v30  ;;  %v3245_v32 = vpop.f32.mrb[126].mxu0  ;;  %3318 = vmatprep.mubr.bf16.mxu1 %v1875_v27 }
 0x324   : > { %v1780_v33 = vadd.f32 %v3245_v32, %v3954_v7  ;;  %v1771_v34 = vpop.f32.mrb[127].mxu0  ;;  %3319 = vmatmul.mubr.bf16.gmra.mrb[116].mxu1 %v1876_v26  ;;  %v1845_v36 = vmax.f32 %v1777_v29, 0.0 }
 0x325   : > { %v1772_v35 = vadd.f32 %v3954_v7, %v1771_v34  ;;  %v1843_v38 = vmax.f32 %v1769_v31, 0.0 }
 0x326   : > { %v1846_v37 = vmax.f32 %v1780_v33, 0.0 }
 0x327   : > { %v1844_v39 = vmax.f32 %v1772_v35, 0.0 }
 0x328   : > { %v1878_v40 = vpack.c.bf16 %v1846_v37, %v1845_v36 }
 0x329   : > { %v1877_v41 = vpack.c.bf16 %v1844_v39, %v1843_v38 }
 0x32b   : > { %3322 = vmatprep.mubr.bf16.mxu1 %v1877_v41 }
 0x32c   : > { %3323 = vmatmul.mubr.bf16.gmra.mrb[120].mxu1 %v1878_v40 }
 0x387   : > { %v3264_v43 = vpop.f32.mrb[128].mxu0 }
 0x388   : > { %v1993_v44 = vadd.f32 %v3264_v43, %v4024_v42  ;;  %v1984_v7 = vpop.f32.mrb[129].mxu0 }
 0x389   : > { %v1985_v45 = vadd.f32 %v4024_v42, %v1984_v7  ;;  %v3265_v46 = vpop.f32.mrb[130].mxu0 }
 0x38a   : > { %2242 = vst.msk [vmem:[%s4028_s15 + $0x10] sm:$0xff] %vm2239_vm3, %v1993_v44  ;;  %v1996_v47 = vadd.f32 %v3265_v46, %v4024_v42  ;;  %v1987_v48 = vpop.f32.mrb[131].mxu0 }
 0x38b   : > { %2240 = vst.msk [vmem:[%s4028_s15] sm:$0xff] %vm2239_vm3, %v1985_v45  ;;  %v1988_v50 = vadd.f32 %v4024_v42, %v1987_v48 }
 0x38c   : > { %2243 = vst.msk [vmem:[%s4028_s15 + $0x18] sm:$0xff] %vm2239_vm3, %v1996_v47 }
 0x38d   : > { %2241 = vst.msk [vmem:[%s4028_s15 + $0x8] sm:$0xff] %vm2239_vm3, %v1988_v50 }
 0x38f   : > { %v3268_v51 = vpop.f32.mrb[64].mxu1 }
 0x390   : > { %v2009_v52 = vadd.f32 %v3268_v51, %v4024_v42  ;;  %v2000_v53 = vpop.f32.mrb[65].mxu1 }
 0x391   : > { %v2001_v54 = vadd.f32 %v4024_v42, %v2000_v53  ;;  %v3269_v55 = vpop.f32.mrb[66].mxu1 }
 0x392   : > { %2246 = vst.msk [vmem:[%s4028_s15 + $0x30] sm:$0xff] %vm2239_vm3, %v2009_v52  ;;  %v2012_v56 = vadd.f32 %v3269_v55, %v4024_v42  ;;  %v2003_v57 = vpop.f32.mrb[67].mxu1 }
 0x393   : > { %2244 = vst.msk [vmem:[%s4028_s15 + $0x20] sm:$0xff] %vm2239_vm3, %v2001_v54  ;;  %v2004_v58 = vadd.f32 %v4024_v42, %v2003_v57 }
 0x394   : > { %2247 = vst.msk [vmem:[%s4028_s15 + $0x38] sm:$0xff] %vm2239_vm3, %v2012_v56 }
 0x395   : > { %2245 = vst.msk [vmem:[%s4028_s15 + $0x28] sm:$0xff] %vm2239_vm3, %v2004_v58 }
 0x397   : > { %v3272_v59 = vpop.f32.mrb[68].mxu1 }
 0x398   : > { %v2025_v60 = vadd.f32 %v3272_v59, %v4024_v42  ;;  %v2016_v61 = vpop.f32.mrb[69].mxu1 }
 0x399   : > { %v2017_v62 = vadd.f32 %v4024_v42, %v2016_v61  ;;  %v3273_v63 = vpop.f32.mrb[70].mxu1 }
 0x39a   : > { %2250 = vst.msk [vmem:[%s4028_s15 + $0x50] sm:$0xff] %vm2239_vm3, %v2025_v60  ;;  %v2028_v0 = vadd.f32 %v3273_v63, %v4024_v42  ;;  %v2019_v1 = vpop.f32.mrb[71].mxu1 }
 0x39b   : > { %2248 = vst.msk [vmem:[%s4028_s15 + $0x40] sm:$0xff] %vm2239_vm3, %v2017_v62  ;;  %v2020_v2 = vadd.f32 %v4024_v42, %v2019_v1 }
 0x39c   : > { %2251 = vst.msk [vmem:[%s4028_s15 + $0x58] sm:$0xff] %vm2239_vm3, %v2028_v0 }
 0x39d   : > { %2249 = vst.msk [vmem:[%s4028_s15 + $0x48] sm:$0xff] %vm2239_vm3, %v2020_v2 }
 0x39f   : > { %v3276_v3 = vpop.f32.mrb[72].mxu1 }
 0x3a0   : > { %v2041_v4 = vadd.f32 %v3276_v3, %v4024_v42  ;;  %v2032_v5 = vpop.f32.mrb[73].mxu1 }
 0x3a1   : > { %v2033_v6 = vadd.f32 %v4024_v42, %v2032_v5  ;;  %v3277_v8 = vpop.f32.mrb[74].mxu1 }
 0x3a2   : > { %2254 = vst.msk [vmem:[%s4028_s15 + $0x70] sm:$0xff] %vm2239_vm3, %v2041_v4  ;;  %v2044_v9 = vadd.f32 %v3277_v8, %v4024_v42  ;;  %v2035_v10 = vpop.f32.mrb[75].mxu1 }
 0x3a3   : > { %2252 = vst.msk [vmem:[%s4028_s15 + $0x60] sm:$0xff] %vm2239_vm3, %v2033_v6  ;;  %v2036_v11 = vadd.f32 %v4024_v42, %v2035_v10 }
 0x3a4   : > { %2255 = vst.msk [vmem:[%s4028_s15 + $0x78] sm:$0xff] %vm2239_vm3, %v2044_v9 }
 0x3a5   : > { %2253 = vst.msk [vmem:[%s4028_s15 + $0x68] sm:$0xff] %vm2239_vm3, %v2036_v11 }
 0x3a7   : > { %v3280_v28 = vpop.f32.mrb[76].mxu1 }
 0x3a8   : > { %v2057_v12 = vadd.f32 %v3280_v28, %v4024_v42  ;;  %v2048_v13 = vpop.f32.mrb[77].mxu1 }
 0x3a9   : > { %v2049_v14 = vadd.f32 %v4024_v42, %v2048_v13  ;;  %v3281_v15 = vpop.f32.mrb[78].mxu1 }
 0x3aa   : > { %2258 = vst.msk [vmem:[%s4028_s15 + $0x90] sm:$0xff] %vm2239_vm3, %v2057_v12  ;;  %v2060_v16 = vadd.f32 %v3281_v15, %v4024_v42  ;;  %v2051_v17 = vpop.f32.mrb[79].mxu1 }
 0x3ab   : > { %2256 = vst.msk [vmem:[%s4028_s15 + $0x80] sm:$0xff] %vm2239_vm3, %v2049_v14  ;;  %v2052_v18 = vadd.f32 %v4024_v42, %v2051_v17 }
 0x3ac   : > { %2259 = vst.msk [vmem:[%s4028_s15 + $0x98] sm:$0xff] %vm2239_vm3, %v2060_v16 }
 0x3ad   : > { %2257 = vst.msk [vmem:[%s4028_s15 + $0x88] sm:$0xff] %vm2239_vm3, %v2052_v18 }
 0x3af   : > { %v3284_v19 = vpop.f32.mrb[80].mxu1 }
 0x3b0   : > { %v2073_v20 = vadd.f32 %v3284_v19, %v4024_v42  ;;  %v2064_v21 = vpop.f32.mrb[81].mxu1 }
 0x3b1   : > { %v2065_v22 = vadd.f32 %v4024_v42, %v2064_v21  ;;  %v3285_v23 = vpop.f32.mrb[82].mxu1 }
 0x3b2   : > { %2262 = vst.msk [vmem:[%s4028_s15 + $0xb0] sm:$0xff] %vm2239_vm3, %v2073_v20  ;;  %v2076_v24 = vadd.f32 %v3285_v23, %v4024_v42  ;;  %v2067_v25 = vpop.f32.mrb[83].mxu1 }
 0x3b3   : > { %2260 = vst.msk [vmem:[%s4028_s15 + $0xa0] sm:$0xff] %vm2239_vm3, %v2065_v22  ;;  %v2068_v26 = vadd.f32 %v4024_v42, %v2067_v25 }
 0x3b4   : > { %2263 = vst.msk [vmem:[%s4028_s15 + $0xb8] sm:$0xff] %vm2239_vm3, %v2076_v24 }
 0x3b5   : > { %2261 = vst.msk [vmem:[%s4028_s15 + $0xa8] sm:$0xff] %vm2239_vm3, %v2068_v26 }
 0x3b7   : > { %v3288_v27 = vpop.f32.mrb[84].mxu1 }
 0x3b8   : > { %v2089_v49 = vadd.f32 %v3288_v27, %v4024_v42  ;;  %v2080_v29 = vpop.f32.mrb[85].mxu1 }
 0x3b9   : > { %v2081_v30 = vadd.f32 %v4024_v42, %v2080_v29  ;;  %v3289_v31 = vpop.f32.mrb[86].mxu1 }
 0x3ba   : > { %2266 = vst.msk [vmem:[%s4028_s15 + $0xd0] sm:$0xff] %vm2239_vm3, %v2089_v49  ;;  %v2092_v32 = vadd.f32 %v3289_v31, %v4024_v42  ;;  %v2083_v33 = vpop.f32.mrb[87].mxu1 }
 0x3bb   : > { %2264 = vst.msk [vmem:[%s4028_s15 + $0xc0] sm:$0xff] %vm2239_vm3, %v2081_v30  ;;  %v2084_v34 = vadd.f32 %v4024_v42, %v2083_v33 }
 0x3bc   : > { %2267 = vst.msk [vmem:[%s4028_s15 + $0xd8] sm:$0xff] %vm2239_vm3, %v2092_v32 }
 0x3bd   : > { %2265 = vst.msk [vmem:[%s4028_s15 + $0xc8] sm:$0xff] %vm2239_vm3, %v2084_v34 }
 0x3bf   : > { %v3292_v35 = vpop.f32.mrb[88].mxu1 }
 0x3c0   : > { %v2105_v36 = vadd.f32 %v3292_v35, %v4024_v42  ;;  %v2096_v37 = vpop.f32.mrb[89].mxu1 }
 0x3c1   : > { %v2097_v38 = vadd.f32 %v4024_v42, %v2096_v37  ;;  %v3293_v39 = vpop.f32.mrb[90].mxu1 }
 0x3c2   : > { %2270 = vst.msk [vmem:[%s4028_s15 + $0xf0] sm:$0xff] %vm2239_vm3, %v2105_v36  ;;  %v2108_v40 = vadd.f32 %v3293_v39, %v4024_v42  ;;  %v2099_v41 = vpop.f32.mrb[91].mxu1 }
 0x3c3   : > { %2268 = vst.msk [vmem:[%s4028_s15 + $0xe0] sm:$0xff] %vm2239_vm3, %v2097_v38  ;;  %v2100_v43 = vadd.f32 %v4024_v42, %v2099_v41 }
 0x3c4   : > { %2271 = vst.msk [vmem:[%s4028_s15 + $0xf8] sm:$0xff] %vm2239_vm3, %v2108_v40 }
 0x3c5   : > { %2269 = vst.msk [vmem:[%s4028_s15 + $0xe8] sm:$0xff] %vm2239_vm3, %v2100_v43 }
 0x3c7   : > { %v3296_v44 = vpop.f32.mrb[92].mxu1 }
 0x3c8   : > { %v2121_v7 = vadd.f32 %v3296_v44, %v4024_v42  ;;  %v2112_v45 = vpop.f32.mrb[93].mxu1 }
 0x3c9   : > { %v2113_v46 = vadd.f32 %v4024_v42, %v2112_v45  ;;  %v3297_v47 = vpop.f32.mrb[94].mxu1 }
 0x3ca   : > { %2274 = vst.msk [vmem:[%s4028_s15 + $0x110] sm:$0xff] %vm2239_vm3, %v2121_v7  ;;  %v2124_v48 = vadd.f32 %v3297_v47, %v4024_v42  ;;  %v2115_v50 = vpop.f32.mrb[95].mxu1 }
 0x3cb   : > { %2272 = vst.msk [vmem:[%s4028_s15 + $0x100] sm:$0xff] %vm2239_vm3, %v2113_v46  ;;  %v2116_v51 = vadd.f32 %v4024_v42, %v2115_v50 }
 0x3cc   : > { %2275 = vst.msk [vmem:[%s4028_s15 + $0x118] sm:$0xff] %vm2239_vm3, %v2124_v48 }
 0x3cd   : > { %2273 = vst.msk [vmem:[%s4028_s15 + $0x108] sm:$0xff] %vm2239_vm3, %v2116_v51 }
 0x3cf   : > { %v3300_v52 = vpop.f32.mrb[96].mxu1 }
 0x3d0   : > { %v2137_v53 = vadd.f32 %v3300_v52, %v4024_v42  ;;  %v2128_v54 = vpop.f32.mrb[97].mxu1 }
 0x3d1   : > { %v2129_v55 = vadd.f32 %v4024_v42, %v2128_v54  ;;  %v3301_v56 = vpop.f32.mrb[98].mxu1 }
 0x3d2   : > { %2278 = vst.msk [vmem:[%s4028_s15 + $0x130] sm:$0xff] %vm2239_vm3, %v2137_v53  ;;  %v2140_v57 = vadd.f32 %v3301_v56, %v4024_v42  ;;  %v2131_v58 = vpop.f32.mrb[99].mxu1 }
 0x3d3   : > { %2276 = vst.msk [vmem:[%s4028_s15 + $0x120] sm:$0xff] %vm2239_vm3, %v2129_v55  ;;  %v2132_v59 = vadd.f32 %v4024_v42, %v2131_v58 }
 0x3d4   : > { %2279 = vst.msk [vmem:[%s4028_s15 + $0x138] sm:$0xff] %vm2239_vm3, %v2140_v57 }
 0x3d5   : > { %2277 = vst.msk [vmem:[%s4028_s15 + $0x128] sm:$0xff] %vm2239_vm3, %v2132_v59 }
 0x3d7   : > { %v3304_v60 = vpop.f32.mrb[100].mxu1 }
 0x3d8   : > { %v2153_v61 = vadd.f32 %v3304_v60, %v4024_v42  ;;  %v2144_v62 = vpop.f32.mrb[101].mxu1 }
 0x3d9   : > { %v2145_v63 = vadd.f32 %v4024_v42, %v2144_v62  ;;  %v3305_v0 = vpop.f32.mrb[102].mxu1 }
 0x3da   : > { %2282 = vst.msk [vmem:[%s4028_s15 + $0x150] sm:$0xff] %vm2239_vm3, %v2153_v61  ;;  %v2156_v1 = vadd.f32 %v3305_v0, %v4024_v42  ;;  %v2147_v2 = vpop.f32.mrb[103].mxu1 }
 0x3db   : > { %2280 = vst.msk [vmem:[%s4028_s15 + $0x140] sm:$0xff] %vm2239_vm3, %v2145_v63  ;;  %v2148_v3 = vadd.f32 %v4024_v42, %v2147_v2 }
 0x3dc   : > { %2283 = vst.msk [vmem:[%s4028_s15 + $0x158] sm:$0xff] %vm2239_vm3, %v2156_v1 }
 0x3dd   : > { %2281 = vst.msk [vmem:[%s4028_s15 + $0x148] sm:$0xff] %vm2239_vm3, %v2148_v3 }
 0x3df   : > { %v3308_v4 = vpop.f32.mrb[104].mxu1 }
 0x3e0   : > { %v2169_v5 = vadd.f32 %v3308_v4, %v4024_v42  ;;  %v2160_v6 = vpop.f32.mrb[105].mxu1 }
 0x3e1   : > { %v2161_v8 = vadd.f32 %v4024_v42, %v2160_v6  ;;  %v3309_v9 = vpop.f32.mrb[106].mxu1 }
 0x3e2   : > { %2286 = vst.msk [vmem:[%s4028_s15 + $0x170] sm:$0xff] %vm2239_vm3, %v2169_v5  ;;  %v2172_v10 = vadd.f32 %v3309_v9, %v4024_v42  ;;  %v2163_v11 = vpop.f32.mrb[107].mxu1 }
 0x3e3   : > { %2284 = vst.msk [vmem:[%s4028_s15 + $0x160] sm:$0xff] %vm2239_vm3, %v2161_v8  ;;  %v2164_v28 = vadd.f32 %v4024_v42, %v2163_v11 }
 0x3e4   : > { %2287 = vst.msk [vmem:[%s4028_s15 + $0x178] sm:$0xff] %vm2239_vm3, %v2172_v10 }
 0x3e5   : > { %2285 = vst.msk [vmem:[%s4028_s15 + $0x168] sm:$0xff] %vm2239_vm3, %v2164_v28 }
 0x3e7   : > { %v3312_v12 = vpop.f32.mrb[108].mxu1 }
 0x3e8   : > { %v2185_v13 = vadd.f32 %v3312_v12, %v4024_v42  ;;  %v2176_v14 = vpop.f32.mrb[109].mxu1 }
 0x3e9   : > { %v2177_v15 = vadd.f32 %v4024_v42, %v2176_v14  ;;  %v3313_v16 = vpop.f32.mrb[110].mxu1 }
 0x3ea   : > { %2290 = vst.msk [vmem:[%s4028_s15 + $0x190] sm:$0xff] %vm2239_vm3, %v2185_v13  ;;  %v2188_v17 = vadd.f32 %v3313_v16, %v4024_v42  ;;  %v2179_v18 = vpop.f32.mrb[111].mxu1 }
 0x3eb   : > { %2288 = vst.msk [vmem:[%s4028_s15 + $0x180] sm:$0xff] %vm2239_vm3, %v2177_v15  ;;  %v2180_v19 = vadd.f32 %v4024_v42, %v2179_v18 }
 0x3ec   : > { %2291 = vst.msk [vmem:[%s4028_s15 + $0x198] sm:$0xff] %vm2239_vm3, %v2188_v17 }
 0x3ed   : > { %2289 = vst.msk [vmem:[%s4028_s15 + $0x188] sm:$0xff] %vm2239_vm3, %v2180_v19 }
 0x3ef   : > { %v3316_v20 = vpop.f32.mrb[112].mxu1 }
 0x3f0   : > { %v2201_v21 = vadd.f32 %v3316_v20, %v4024_v42  ;;  %v2192_v22 = vpop.f32.mrb[113].mxu1 }
 0x3f1   : > { %v2193_v23 = vadd.f32 %v4024_v42, %v2192_v22  ;;  %v3317_v24 = vpop.f32.mrb[114].mxu1 }
 0x3f2   : > { %2294 = vst.msk [vmem:[%s4028_s15 + $0x1b0] sm:$0xff] %vm2239_vm3, %v2201_v21  ;;  %v2204_v25 = vadd.f32 %v3317_v24, %v4024_v42  ;;  %v2195_v26 = vpop.f32.mrb[115].mxu1 }
 0x3f3   : > { %2292 = vst.msk [vmem:[%s4028_s15 + $0x1a0] sm:$0xff] %vm2239_vm3, %v2193_v23  ;;  %v2196_v27 = vadd.f32 %v4024_v42, %v2195_v26 }
 0x3f4   : > { %2295 = vst.msk [vmem:[%s4028_s15 + $0x1b8] sm:$0xff] %vm2239_vm3, %v2204_v25 }
 0x3f5   : > { %2293 = vst.msk [vmem:[%s4028_s15 + $0x1a8] sm:$0xff] %vm2239_vm3, %v2196_v27 }
 0x3f7   : > { %v3320_v49 = vpop.f32.mrb[116].mxu1 }
 0x3f8   : > { %v2217_v29 = vadd.f32 %v3320_v49, %v4024_v42  ;;  %v2208_v30 = vpop.f32.mrb[117].mxu1 }
 0x3f9   : > { %v2209_v31 = vadd.f32 %v4024_v42, %v2208_v30  ;;  %v3321_v32 = vpop.f32.mrb[118].mxu1 }
 0x3fa   : > { %2298 = vst.msk [vmem:[%s4028_s15 + $0x1d0] sm:$0xff] %vm2239_vm3, %v2217_v29  ;;  %v2220_v33 = vadd.f32 %v3321_v32, %v4024_v42  ;;  %v2211_v34 = vpop.f32.mrb[119].mxu1 }
 0x3fb   : > { %2296 = vst.msk [vmem:[%s4028_s15 + $0x1c0] sm:$0xff] %vm2239_vm3, %v2209_v31  ;;  %v2212_v35 = vadd.f32 %v4024_v42, %v2211_v34 }
 0x3fc   : > { %2299 = vst.msk [vmem:[%s4028_s15 + $0x1d8] sm:$0xff] %vm2239_vm3, %v2220_v33 }
 0x3fd   : > { %2297 = vst.msk [vmem:[%s4028_s15 + $0x1c8] sm:$0xff] %vm2239_vm3, %v2212_v35 }
 0x3ff   : > { %v3324_v36 = vpop.f32.mrb[120].mxu1  ;;  %2310 = sbr.rel (!%p3622_p4) target bundleno = 1102 (0x44e), region = 60 }
 0x400   : > { %v2233_v37 = vadd.f32 %v3324_v36, %v4024_v42  ;;  %v2224_v38 = vpop.f32.mrb[121].mxu1 }
 0x401   : > { %v2225_v39 = vadd.f32 %v4024_v42, %v2224_v38  ;;  %v3325_v40 = vpop.f32.mrb[122].mxu1 }
 0x402   : > { %2302 = vst.msk [vmem:[%s4028_s15 + $0x1f0] sm:$0xff] %vm2239_vm3, %v2233_v37  ;;  %v2236_v41 = vadd.f32 %v3325_v40, %v4024_v42  ;;  %v2227_v43 = vpop.f32.mrb[123].mxu1 }
 0x403   : > { %2300 = vst.msk [vmem:[%s4028_s15 + $0x1e0] sm:$0xff] %vm2239_vm3, %v2225_v39  ;;  %v2228_v44 = vadd.f32 %v4024_v42, %v2227_v43 }
 0x404   : > { %2303 = vst.msk [vmem:[%s4028_s15 + $0x1f8] sm:$0xff] %vm2239_vm3, %v2236_v41 }
 0x405   : > { %2301 = vst.msk [vmem:[%s4028_s15 + $0x1e8] sm:$0xff] %vm2239_vm3, %v2228_v44 }
 0x406   : > { %s4446_s30 = smov (!%p2313_p8, %s2312_s30), 64 }
 0x407   : > { %s2843_s23 = sshll.u32 %s4446_s30, 7 }
 0x408   : > { %p2846_p9 = scmp.eq.s32.totalorder %s2843_s23, 0 }
 0x409   : > { %s4233_s18 = sshrl.u32 (!%p2846_p9), %s4446_s30, 6 }
 0x40a   : > { %2321 = sbr.rel (%p2846_p9) target bundleno = 1102 (0x44e), region = 64  ;;  %p2847_p10 = scmp.le.s32.totalorder (!%p2846_p9), %s4233_s18, 0 }
 0x411   : > { %2727 = sbr.rel (%p2847_p10) target bundleno = 1081 (0x439), region = 140  ;;  %s4437_s12 = smov (!%p2847_p10), %s4227_s22 }
 0x412   : > { %s4438_s17 = smov (!%p2847_p10), %s4028_s15  ;;  %s4242_s24 = smov (!%p2847_p10), 0  }
 0x413   : > { %s4244_s25 = smov (!%p2847_p10), 0  }
 0x418 LB: >> { %v2509_v42 = vld [vmem:[%s3520_s17] sm:$0xff]  ;;  %v2511_v7 = vld [vmem:[%s3520_s17 + $0x8] sm:$0xff]  ;;  %v2513_v45 = vld [vmem:[%s3520_s17 + $0x10] sm:$0xff]  ;;  %s2637_s26 = sadd.s32 1, %s3524_s24  ;;  %s2503_s25 = sadd.s32 1, %s3528_s25   ;;  %s3528_s25 = sphi %s4244_s25, %s2503_s25   ;;  %s3524_s24 = sphi %s4242_s24, %s4441_s24   ;;  %s3520_s17 = sphi %s4438_s17, %s4440_s17   ;;  %s3516_s12 = sphi %s4437_s12, %s4439_s12  }
 0x419   : >> { %2510 = vst [vmem:[%s3516_s12] sm:$0xff] %v2509_v42  ;;  %2512 = vst [vmem:[%s3516_s12 + $0x8] sm:$0xff] %v2511_v7  ;;  %v2515_v46 = vld [vmem:[%s3520_s17 + $0x18] sm:$0xff]  ;;  %v2517_v47 = vld [vmem:[%s3520_s17 + $0x20] sm:$0xff]  ;;  %p2638_p11 = scmp.ge.s32.totalorder %s2637_s26, %s4233_s18  ;;  %p2502_p12 = scmp.ge.s32.totalorder %s2503_s25, %s4233_s18 }
 0x41a   : >> { %2514 = vst [vmem:[%s3516_s12 + $0x10] sm:$0xff] %v2513_v45  ;;  %v2519_v48 = vld [vmem:[%s3520_s17 + $0x28] sm:$0xff]  ;;  %2516 = vst [vmem:[%s3516_s12 + $0x18] sm:$0xff] %v2515_v46  ;;  %v2521_v50 = vld [vmem:[%s3520_s17 + $0x30] sm:$0xff] }
 0x41b   : >> { %2518 = vst [vmem:[%s3516_s12 + $0x20] sm:$0xff] %v2517_v47  ;;  %2520 = vst [vmem:[%s3516_s12 + $0x28] sm:$0xff] %v2519_v48  ;;  %v2523_v51 = vld [vmem:[%s3520_s17 + $0x38] sm:$0xff]  ;;  %v2525_v52 = vld [vmem:[%s3520_s17 + $0x40] sm:$0xff]  ;;  %s4448_s26 = smov (%p2638_p11, %s2637_s26), 0 }
 0x41c   : >> { %2522 = vst [vmem:[%s3516_s12 + $0x30] sm:$0xff] %v2521_v50  ;;  %2524 = vst [vmem:[%s3516_s12 + $0x38] sm:$0xff] %v2523_v51  ;;  %v2527_v53 = vld [vmem:[%s3520_s17 + $0x48] sm:$0xff]  ;;  %v2529_v54 = vld [vmem:[%s3520_s17 + $0x50] sm:$0xff]  ;;  %s2848_s27 = sshll.u32 %s4448_s26, 9  ;;  %s4441_s24 = smov %s4448_s26 }
 0x41d   : >> { %2526 = vst [vmem:[%s3516_s12 + $0x40] sm:$0xff] %v2525_v52  ;;  %v2531_v55 = vld [vmem:[%s3520_s17 + $0x58] sm:$0xff]  ;;  %2528 = vst [vmem:[%s3516_s12 + $0x48] sm:$0xff] %v2527_v53  ;;  %v2533_v56 = vld [vmem:[%s3520_s17 + $0x60] sm:$0xff]  ;;  %s4300_s28 = scalar_lea.vmem %s4028_s15, %s2848_s27 [#allocation2]   ;;  %s4303_s29 = scalar_lea.vmem %s4227_s22, %s2848_s27  }
 0x41e   : >> { %2530 = vst [vmem:[%s3516_s12 + $0x50] sm:$0xff] %v2529_v54  ;;  %2532 = vst [vmem:[%s3516_s12 + $0x58] sm:$0xff] %v2531_v55  ;;  %v2535_v57 = vld [vmem:[%s3520_s17 + $0x68] sm:$0xff]  ;;  %v2537_v58 = vld [vmem:[%s3520_s17 + $0x70] sm:$0xff] }
 0x41f   : >> { %2534 = vst [vmem:[%s3516_s12 + $0x60] sm:$0xff] %v2533_v56  ;;  %2536 = vst [vmem:[%s3516_s12 + $0x68] sm:$0xff] %v2535_v57  ;;  %v2539_v59 = vld [vmem:[%s3520_s17 + $0x78] sm:$0xff]  ;;  %v2541_v60 = vld [vmem:[%s3520_s17 + $0x80] sm:$0xff] }
 0x420   : >> { %2538 = vst [vmem:[%s3516_s12 + $0x70] sm:$0xff] %v2537_v58  ;;  %v2543_v61 = vld [vmem:[%s3520_s17 + $0x88] sm:$0xff]  ;;  %2540 = vst [vmem:[%s3516_s12 + $0x78] sm:$0xff] %v2539_v59  ;;  %v2545_v62 = vld [vmem:[%s3520_s17 + $0x90] sm:$0xff] }
 0x421   : >> { %2542 = vst [vmem:[%s3516_s12 + $0x80] sm:$0xff] %v2541_v60  ;;  %2544 = vst [vmem:[%s3516_s12 + $0x88] sm:$0xff] %v2543_v61  ;;  %v2547_v63 = vld [vmem:[%s3520_s17 + $0x98] sm:$0xff]  ;;  %v2549_v0 = vld [vmem:[%s3520_s17 + $0xa0] sm:$0xff] }
 0x422   : >> { %2546 = vst [vmem:[%s3516_s12 + $0x90] sm:$0xff] %v2545_v62  ;;  %2548 = vst [vmem:[%s3516_s12 + $0x98] sm:$0xff] %v2547_v63  ;;  %v2551_v1 = vld [vmem:[%s3520_s17 + $0xa8] sm:$0xff]  ;;  %v2553_v2 = vld [vmem:[%s3520_s17 + $0xb0] sm:$0xff] }
 0x423   : >> { %2550 = vst [vmem:[%s3516_s12 + $0xa0] sm:$0xff] %v2549_v0  ;;  %v2555_v3 = vld [vmem:[%s3520_s17 + $0xb8] sm:$0xff]  ;;  %2552 = vst [vmem:[%s3516_s12 + $0xa8] sm:$0xff] %v2551_v1  ;;  %v2557_v4 = vld [vmem:[%s3520_s17 + $0xc0] sm:$0xff] }
 0x424   : >> { %2554 = vst [vmem:[%s3516_s12 + $0xb0] sm:$0xff] %v2553_v2  ;;  %2556 = vst [vmem:[%s3516_s12 + $0xb8] sm:$0xff] %v2555_v3  ;;  %v2559_v5 = vld [vmem:[%s3520_s17 + $0xc8] sm:$0xff]  ;;  %v2561_v6 = vld [vmem:[%s3520_s17 + $0xd0] sm:$0xff] }
 0x425   : >> { %2558 = vst [vmem:[%s3516_s12 + $0xc0] sm:$0xff] %v2557_v4  ;;  %2560 = vst [vmem:[%s3516_s12 + $0xc8] sm:$0xff] %v2559_v5  ;;  %v2563_v8 = vld [vmem:[%s3520_s17 + $0xd8] sm:$0xff]  ;;  %v2565_v9 = vld [vmem:[%s3520_s17 + $0xe0] sm:$0xff] }
 0x426   : >> { %2562 = vst [vmem:[%s3516_s12 + $0xd0] sm:$0xff] %v2561_v6  ;;  %v2567_v10 = vld [vmem:[%s3520_s17 + $0xe8] sm:$0xff]  ;;  %2564 = vst [vmem:[%s3516_s12 + $0xd8] sm:$0xff] %v2563_v8  ;;  %v2569_v11 = vld [vmem:[%s3520_s17 + $0xf0] sm:$0xff] }
 0x427   : >> { %2566 = vst [vmem:[%s3516_s12 + $0xe0] sm:$0xff] %v2565_v9  ;;  %2568 = vst [vmem:[%s3516_s12 + $0xe8] sm:$0xff] %v2567_v10  ;;  %v2571_v28 = vld [vmem:[%s3520_s17 + $0xf8] sm:$0xff]  ;;  %v2573_v12 = vld [vmem:[%s3520_s17 + $0x100] sm:$0xff] }
 0x428   : >> { %2570 = vst [vmem:[%s3516_s12 + $0xf0] sm:$0xff] %v2569_v11  ;;  %2572 = vst [vmem:[%s3516_s12 + $0xf8] sm:$0xff] %v2571_v28  ;;  %v2575_v13 = vld [vmem:[%s3520_s17 + $0x108] sm:$0xff]  ;;  %v2577_v14 = vld [vmem:[%s3520_s17 + $0x110] sm:$0xff] }
 0x429   : >> { %2574 = vst [vmem:[%s3516_s12 + $0x100] sm:$0xff] %v2573_v12  ;;  %v2579_v15 = vld [vmem:[%s3520_s17 + $0x118] sm:$0xff]  ;;  %2576 = vst [vmem:[%s3516_s12 + $0x108] sm:$0xff] %v2575_v13  ;;  %v2581_v16 = vld [vmem:[%s3520_s17 + $0x120] sm:$0xff] }
 0x42a   : >> { %2578 = vst [vmem:[%s3516_s12 + $0x110] sm:$0xff] %v2577_v14  ;;  %2580 = vst [vmem:[%s3516_s12 + $0x118] sm:$0xff] %v2579_v15  ;;  %v2583_v17 = vld [vmem:[%s3520_s17 + $0x128] sm:$0xff]  ;;  %v2585_v18 = vld [vmem:[%s3520_s17 + $0x130] sm:$0xff] }
 0x42b   : >> { %2582 = vst [vmem:[%s3516_s12 + $0x120] sm:$0xff] %v2581_v16  ;;  %2584 = vst [vmem:[%s3516_s12 + $0x128] sm:$0xff] %v2583_v17  ;;  %v2587_v19 = vld [vmem:[%s3520_s17 + $0x138] sm:$0xff]  ;;  %v2589_v20 = vld [vmem:[%s3520_s17 + $0x140] sm:$0xff] }
 0x42c   : >> { %2586 = vst [vmem:[%s3516_s12 + $0x130] sm:$0xff] %v2585_v18  ;;  %v2591_v21 = vld [vmem:[%s3520_s17 + $0x148] sm:$0xff]  ;;  %2588 = vst [vmem:[%s3516_s12 + $0x138] sm:$0xff] %v2587_v19  ;;  %v2593_v22 = vld [vmem:[%s3520_s17 + $0x150] sm:$0xff] }
 0x42d   : >> { %2590 = vst [vmem:[%s3516_s12 + $0x140] sm:$0xff] %v2589_v20  ;;  %2592 = vst [vmem:[%s3516_s12 + $0x148] sm:$0xff] %v2591_v21  ;;  %v2595_v23 = vld [vmem:[%s3520_s17 + $0x158] sm:$0xff]  ;;  %v2597_v24 = vld [vmem:[%s3520_s17 + $0x160] sm:$0xff] }
 0x42e   : >> { %2594 = vst [vmem:[%s3516_s12 + $0x150] sm:$0xff] %v2593_v22  ;;  %2596 = vst [vmem:[%s3516_s12 + $0x158] sm:$0xff] %v2595_v23  ;;  %v2599_v25 = vld [vmem:[%s3520_s17 + $0x168] sm:$0xff]  ;;  %v2601_v26 = vld [vmem:[%s3520_s17 + $0x170] sm:$0xff] }
 0x42f   : >> { %2598 = vst [vmem:[%s3516_s12 + $0x160] sm:$0xff] %v2597_v24  ;;  %v2603_v27 = vld [vmem:[%s3520_s17 + $0x178] sm:$0xff]  ;;  %2600 = vst [vmem:[%s3516_s12 + $0x168] sm:$0xff] %v2599_v25  ;;  %v2605_v49 = vld [vmem:[%s3520_s17 + $0x180] sm:$0xff] }
 0x430   : >> { %2602 = vst [vmem:[%s3516_s12 + $0x170] sm:$0xff] %v2601_v26  ;;  %2604 = vst [vmem:[%s3516_s12 + $0x178] sm:$0xff] %v2603_v27  ;;  %v2607_v29 = vld [vmem:[%s3520_s17 + $0x188] sm:$0xff]  ;;  %v2609_v30 = vld [vmem:[%s3520_s17 + $0x190] sm:$0xff] }
 0x431   : >> { %2606 = vst [vmem:[%s3516_s12 + $0x180] sm:$0xff] %v2605_v49  ;;  %2608 = vst [vmem:[%s3516_s12 + $0x188] sm:$0xff] %v2607_v29  ;;  %v2611_v31 = vld [vmem:[%s3520_s17 + $0x198] sm:$0xff]  ;;  %v2613_v32 = vld [vmem:[%s3520_s17 + $0x1a0] sm:$0xff] }
 0x432   : >> { %2610 = vst [vmem:[%s3516_s12 + $0x190] sm:$0xff] %v2609_v30  ;;  %v2615_v33 = vld [vmem:[%s3520_s17 + $0x1a8] sm:$0xff]  ;;  %2612 = vst [vmem:[%s3516_s12 + $0x198] sm:$0xff] %v2611_v31  ;;  %v2617_v34 = vld [vmem:[%s3520_s17 + $0x1b0] sm:$0xff]  ;;  %2505 = sbr.rel (!%p2502_p12) target bundleno = 1048 (0x418), region = 146 }
 0x433   : >> { %2614 = vst [vmem:[%s3516_s12 + $0x1a0] sm:$0xff] %v2613_v32  ;;  %2616 = vst [vmem:[%s3516_s12 + $0x1a8] sm:$0xff] %v2615_v33  ;;  %v2619_v35 = vld [vmem:[%s3520_s17 + $0x1b8] sm:$0xff]  ;;  %v2621_v36 = vld [vmem:[%s3520_s17 + $0x1c0] sm:$0xff] }
 0x434   : >> { %2618 = vst [vmem:[%s3516_s12 + $0x1b0] sm:$0xff] %v2617_v34  ;;  %2620 = vst [vmem:[%s3516_s12 + $0x1b8] sm:$0xff] %v2619_v35  ;;  %v2623_v37 = vld [vmem:[%s3520_s17 + $0x1c8] sm:$0xff]  ;;  %v2625_v38 = vld [vmem:[%s3520_s17 + $0x1d0] sm:$0xff] }
 0x435   : >> { %2622 = vst [vmem:[%s3516_s12 + $0x1c0] sm:$0xff] %v2621_v36  ;;  %v2627_v39 = vld [vmem:[%s3520_s17 + $0x1d8] sm:$0xff]  ;;  %2624 = vst [vmem:[%s3516_s12 + $0x1c8] sm:$0xff] %v2623_v37  ;;  %v2629_v40 = vld [vmem:[%s3520_s17 + $0x1e0] sm:$0xff] }
 0x436   : >> { %2626 = vst [vmem:[%s3516_s12 + $0x1d0] sm:$0xff] %v2625_v38  ;;  %2628 = vst [vmem:[%s3516_s12 + $0x1d8] sm:$0xff] %v2627_v39  ;;  %v2631_v41 = vld [vmem:[%s3520_s17 + $0x1e8] sm:$0xff]  ;;  %v2633_v43 = vld [vmem:[%s3520_s17 + $0x1f0] sm:$0xff] }
 0x437   : >> { %2630 = vst [vmem:[%s3516_s12 + $0x1e0] sm:$0xff] %v2629_v40  ;;  %2632 = vst [vmem:[%s3516_s12 + $0x1e8] sm:$0xff] %v2631_v41  ;;  %v2635_v44 = vld [vmem:[%s3520_s17 + $0x1f8] sm:$0xff]  ;;  %s4440_s17 = smov %s4300_s28 }
 0x438   : >> { %2634 = vst [vmem:[%s3516_s12 + $0x1f0] sm:$0xff] %v2633_v43  ;;  %2636 = vst [vmem:[%s3516_s12 + $0x1f8] sm:$0xff] %v2635_v44  ;;  %s4439_s12 = smov %s4303_s29 }
 0x439 PF: > { %s4408_s11 = sand.u32 63, %s4446_s30   ;;  %s2859_s14 = sshll.u32 %s4233_s18, 9 }
 0x43a   : > { %s2648_s19 = scalar_lea.vmem %s4028_s15, %s2859_s14 [#allocation2]   ;;  %s2650_s20 = scalar_lea.vmem %s4227_s22, %s2859_s14  }
 0x43b   : > { %p2853_p13 = scmp.le.s32.totalorder %s4408_s11, 0 }
 0x43c   : > { %s3530_s21 = smov (!%p2853_p13), %s2650_s20   ;;  %s3534_s23 = smov (!%p2853_p13), %s2648_s19  }
 0x43d   : > { %2741 = sbr.rel (%p2853_p13) target bundleno = 1102 (0x44e), region = 151  ;;  %s3538_s27 = smov (!%p2853_p13), 0  }
 0x43e   : > { %s3542_s26 = smov (!%p2853_p13), 0  }
 0x444 LB: >> { %v2660_v42 = vld [vmem:[%s3536_s23] sm:$0xff]  ;;  %s2662_s30 = sadd.s32 1, %s3540_s27  ;;  %s2654_s26 = sadd.s32 1, %s3544_s26   ;;  %s3544_s26 = sphi %s3542_s26, %s2654_s26   ;;  %s3540_s27 = sphi %s3538_s27, %s3539_s27   ;;  %s3536_s23 = sphi %s3534_s23, %s2667_s23   ;;  %s3532_s21 = sphi %s3530_s21, %s2668_s21  }
 0x445   : >> { %2661 = vst [vmem:[%s3532_s21] sm:$0xff] %v2660_v42  ;;  %p2663_p0 = scmp.ge.s32.totalorder %s2662_s30, %s4408_s11  ;;  %p2653_p1 = scmp.ge.s32.totalorder %s2654_s26, %s4408_s11 }
 0x447   : >> { %s4450_s30 = smov (%p2663_p0, %s2662_s30), 0  ;;  %2656 = sbr.rel (!%p2653_p1) target bundleno = 1092 (0x444), region = 157 }
 0x448   : >> { %s2854_s15 = sshll.u32 %s4450_s30, 3  ;;  %s3539_s27 = smov %s4450_s30  }
 0x449   : >> { %s2667_s23 = scalar_lea.vmem %s2648_s19, %s2854_s15 [#allocation2]   ;;  %s2668_s21 = scalar_lea.vmem %s2650_s20, %s2854_s15  }
 0x44e PF: > { %p16_p2 = scmp.ge.s32.totalorder %s3612_s13, 4   ;;  %s4442_s30 = smov %s3508_s10 }
 0x44f   : > { %s4443_s10 = smov %s3620_s16  ;;  %s4444_s11 = smov %s3612_s13 }
 0x450   :  { %18 = sbr.rel (!%p16_p2) target bundleno = 2 (0x2), region = 168 }

</bundles_post_ra>
